<compile_context>
chip_gen: v6e
topology: v6e:2x2x1
jax: 0.10.0
libtpu: 0.0.40
codegen_flags: <defaults>
</compile_context>

<pallas_src>
import functools

import jax
import jax.numpy as jnp
from jax.experimental import pallas as pl
from jax.experimental.pallas import tpu as pltpu

DROPOUT_P = 0.2
N_EMBED = 384  # matches the PyTorch module constant


def _round_up(n, m):
    return ((n + m - 1) // m) * m


def _ffn_kernel(seed_ref, x_ref, w1_ref, b1_ref, w2_ref, b2_ref, o_ref,
                *, training: bool, dropout_p: float, tm: int, d_model: int,
                hidden: int, h_chunk: int):
    # x tile once, as bf16 MXU operand (reused by every hidden chunk).
    x_bf = x_ref[...].astype(jnp.bfloat16)

    # Hidden dimension tiled: never materialize the full (TM, H) f32 hidden.
    # Per chunk: h_bf = relu(x @ W1[:, c] + b1[c]) cast straight to bf16
    # (largest live intermediate is (TM, h_chunk) bf16), then accumulate
    # y += h_bf @ W2[c, :] in f32.
    y = None
    for c in range(hidden // h_chunk):
        lo = c * h_chunk
        h = jnp.dot(x_bf, w1_ref[:, lo:lo + h_chunk],
                    preferred_element_type=jnp.float32)
        h_bf = jnp.maximum(h + b1_ref[:, lo:lo + h_chunk], 0.0).astype(jnp.bfloat16)
        yc = jnp.dot(h_bf, w2_ref[lo:lo + h_chunk, :],
                     preferred_element_type=jnp.float32)
        y = yc if y is None else y + yc
    y = y + b2_ref[...]

    if training and dropout_p > 0.0:
        # Inverted dropout (nn.Dropout(p) train-mode semantics): keep with
        # prob (1-p), scale kept activations by 1/(1-p).  Counter-based PRNG:
        # cheap xorshift-multiply hash of the global element index + salted
        # seed, then an unsigned threshold compare (no float conversion).
        rows = jax.lax.broadcasted_iota(jnp.int32, y.shape, 0).astype(jnp.uint32)
        cols = jax.lax.broadcasted_iota(jnp.int32, y.shape, 1).astype(jnp.uint32)
        base = (pl.program_id(0) * tm).astype(jnp.uint32) * jnp.uint32(d_model)
        glin = rows * jnp.uint32(d_model) + cols + base     # global element id

        seed_u = seed_ref[0].astype(jnp.uint32)
        # Salt is nonzero even for seed=0 so the mask is never purely index-derived.
        salt = (seed_u + jnp.uint32(0x9E3779B9)) * jnp.uint32(0x85EBCA6B)

        u = (glin + salt) * jnp.uint32(0x9E3779B1)
        u = u ^ (u >> 16)
        u = u * jnp.uint32(0x27D4EB2F)

        thr = jnp.uint32(min(int(round(dropout_p * 4294967296.0)), 4294967295))
        keep = u >= thr
        y = jnp.where(keep, y * (1.0 / (1.0 - dropout_p)), 0.0)

    o_ref[...] = y.astype(o_ref.dtype)


def prepare_ffn_params(w1, b1, w2, b2):
    """One-time param prep (do NOT call per forward): bf16 weights, f32 biases."""
    return {
        "w1": w1.astype(jnp.bfloat16),                    # (D, H)
        "b1": b1.reshape(1, -1).astype(jnp.float32),      # (1, H)
        "w2": w2.astype(jnp.bfloat16),                    # (H, D)
        "b2": b2.reshape(1, -1).astype(jnp.float32),      # (1, D)
    }


def feed_forward(x, params, *, seed=0, training=True, tm=512):
    """x: (B, T, D) f32; params from prepare_ffn_params."""
    B, T, D = x.shape
    H = params["w1"].shape[1]
    M = B * T
    x2 = x.reshape(M, D)

    # Row tile: multiple of 8 (f32 sublane), capped at `tm`.  Keep >= 2 grid
    # steps whenever possible so both v7x TensorCores get work.
    tm_eff = min(tm, _round_up(M, 8))
    if M > 8 and pl.cdiv(M, tm_eff) < 2:
        tm_eff = _round_up(pl.cdiv(M, 2), 8)
    grid = (pl.cdiv(M, tm_eff),)   # ragged last block handled by Pallas masking

    # Hidden-dim chunk for the in-kernel loop (lane-aligned).
    h_chunk = 512 if H % 512 == 0 else H

    kernel = functools.partial(_ffn_kernel, training=training,
                               dropout_p=DROPOUT_P, tm=tm_eff, d_model=D,
                               hidden=H, h_chunk=h_chunk)
    seed_arr = jnp.asarray([seed], dtype=jnp.int32)

    out = pl.pallas_call(
        kernel,
        out_shape=jax.ShapeDtypeStruct((M, D), x.dtype),
        grid_spec=pltpu.PrefetchScalarGridSpec(
            num_scalar_prefetch=1,          # dropout seed -> SMEM
            grid=grid,
            in_specs=[
                pl.BlockSpec((tm_eff, D), lambda i, s: (i, 0)),  # x tile (streamed)
                pl.BlockSpec((D, H), lambda i, s: (0, 0)),       # w1 (VMEM-resident)
                pl.BlockSpec((1, H), lambda i, s: (0, 0)),       # b1
                pl.BlockSpec((H, D), lambda i, s: (0, 0)),       # w2 (VMEM-resident)
                pl.BlockSpec((1, D), lambda i, s: (0, 0)),       # b2
            ],
            out_specs=pl.BlockSpec((tm_eff, D), lambda i, s: (i, 0)),
        ),
        compiler_params=pltpu.CompilerParams(
            dimension_semantics=("parallel",),
            vmem_limit_bytes=48 * 1024 * 1024),
    )(seed_arr, x2, params["w1"], params["b1"], params["w2"], params["b2"])

    return out.reshape(B, T, D)


def _init_params(key, d, h):
    # Deterministic init mirroring torch.nn.Linear: U(-1/sqrt(fan_in), ...).
    k1, k2, k3, k4 = jax.random.split(key, 4)
    bound1 = 1.0 / jnp.sqrt(d)
    bound2 = 1.0 / jnp.sqrt(h)
    w1 = jax.random.uniform(k1, (d, h), jnp.float32, -bound1, bound1)
    b1 = jax.random.uniform(k2, (h,), jnp.float32, -bound1, bound1)
    w2 = jax.random.uniform(k3, (h, d), jnp.float32, -bound2, bound2)
    b2 = jax.random.uniform(k4, (d,), jnp.float32, -bound2, bound2)
    return w1, b1, w2, b2


if __name__ == "__main__":
    key = jax.random.PRNGKey(0)
    k_x, k_p = jax.random.split(key)

    B, T, D = 2, 8, N_EMBED
    H = 4 * D
    x = jax.random.normal(k_x, (B, T, D), jnp.float32)
    w1, b1, w2, b2 = _init_params(k_p, D, H)

    # One-time bf16 conversion outside the hot path.
    params = prepare_ffn_params(w1, b1, w2, b2)

    # Eval-mode (no dropout) correctness check against a reference using the
    # same bf16-operand / f32-accumulation matmuls as the kernel.
    y_eval = jax.block_until_ready(feed_forward(x, params, training=False))
    xb = x.reshape(-1, D).astype(jnp.bfloat16)
    h_ref = jnp.maximum(
        jnp.dot(xb, w1.astype(jnp.bfloat16), preferred_element_type=jnp.float32) + b1,
        0.0)
    ref = jnp.dot(h_ref.astype(jnp.bfloat16), w2.astype(jnp.bfloat16),
                  preferred_element_type=jnp.float32) + b2
    ref = ref.reshape(B, T, D)
    assert jnp.allclose(y_eval, ref, atol=2e-2, rtol=2e-2), "eval-mode mismatch"

    # Train-mode run (dropout active, deterministic given the seed).
    y_train = jax.block_until_ready(
        feed_forward(x, params, seed=1234, training=True))
    assert y_train.shape == (B, T, D)
    frac_zero = float(jnp.mean(y_train == 0.0))
    assert 0.05 < frac_zero < 0.45, f"unexpected dropout zero fraction {frac_zero}"

    print("KERNEL_OK")
</pallas_src>

<mosaic_0001>
module attributes {stable_mosaic.version = 11 : i64} {
  func.func @_ffn_kernel(%arg0: i32, %arg1: memref<1xi32, #tpu.memory_space<smem>>, %arg2: memref<8x384xf32, #tpu.memory_space<vmem>>, %arg3: memref<384x1536xbf16, #tpu.memory_space<vmem>>, %arg4: memref<1x1536xf32, #tpu.memory_space<vmem>>, %arg5: memref<1536x384xbf16, #tpu.memory_space<vmem>>, %arg6: memref<1x384xf32, #tpu.memory_space<vmem>>, %arg7: memref<8x384xf32, #tpu.memory_space<vmem>>) attributes {dimension_semantics = [#tpu.dimension_semantics<parallel>], iteration_bounds = array<i64: 2>, scalar_prefetch = 1 : i64, scratch_operands = 0 : i64, tpu.core_type = #tpu.core_type<tc>, window_params = [{transform_indices = @transform_0, window_bounds = array<i64: 8, 384>}, {pipeline_mode = #tpu.pipeline_mode<synchronous>, transform_indices = @transform_1, window_bounds = array<i64: 384, 1536>}, {pipeline_mode = #tpu.pipeline_mode<synchronous>, transform_indices = @transform_2, window_bounds = array<i64: 1, 1536>}, {pipeline_mode = #tpu.pipeline_mode<synchronous>, transform_indices = @transform_3, window_bounds = array<i64: 1536, 384>}, {pipeline_mode = #tpu.pipeline_mode<synchronous>, transform_indices = @transform_4, window_bounds = array<i64: 1, 384>}, {transform_indices = @transform_5, window_bounds = array<i64: 8, 384>}]} {
    %c0 = arith.constant 0 : index
    %c0_0 = arith.constant 0 : index
    %0 = vector.load %arg2[%c0, %c0_0] : memref<8x384xf32, #tpu.memory_space<vmem>>, vector<8x384xf32>
    %1 = arith.truncf %0 : vector<8x384xf32> to vector<8x384xbf16>
    %c0_1 = arith.constant 0 : index
    %c0_2 = arith.constant 0 : index
    %2 = vector.load %arg3[%c0_1, %c0_2] : memref<384x1536xbf16, #tpu.memory_space<vmem>>, vector<384x512xbf16>
    %cst = arith.constant dense<0.000000e+00> : vector<8x512xf32>
    %3 = tpu.matmul %1, %2, %cst {dimension_numbers = #tpu.dot_dimension_numbers<[1], [0], [0], [1], [0, 0, 1, 1], [], []>} : vector<8x384xbf16>, vector<384x512xbf16>, vector<8x512xf32> -> vector<8x512xf32>
    %c0_3 = arith.constant 0 : index
    %c0_4 = arith.constant 0 : index
    %4 = vector.load %arg4[%c0_3, %c0_4] : memref<1x1536xf32, #tpu.memory_space<vmem>>, vector<1x512xf32>
    %5 = vector.broadcast %4 : vector<1x512xf32> to vector<8x512xf32>
    %6 = arith.addf %3, %5 : vector<8x512xf32>
    %cst_5 = arith.constant 0.000000e+00 : f32
    %7 = vector.broadcast %cst_5 : f32 to vector<8x512xf32>
    %8 = arith.maximumf %6, %7 : vector<8x512xf32>
    %9 = arith.truncf %8 : vector<8x512xf32> to vector<8x512xbf16>
    %c0_6 = arith.constant 0 : index
    %c0_7 = arith.constant 0 : index
    %10 = vector.load %arg5[%c0_6, %c0_7] : memref<1536x384xbf16, #tpu.memory_space<vmem>>, vector<512x384xbf16>
    %cst_8 = arith.constant dense<0.000000e+00> : vector<8x384xf32>
    %11 = tpu.matmul %9, %10, %cst_8 {dimension_numbers = #tpu.dot_dimension_numbers<[1], [0], [0], [1], [0, 0, 1, 1], [], []>} : vector<8x512xbf16>, vector<512x384xbf16>, vector<8x384xf32> -> vector<8x384xf32>
    %c0_9 = arith.constant 0 : index
    %c512 = arith.constant 512 : index
    %12 = vector.load %arg3[%c0_9, %c512] : memref<384x1536xbf16, #tpu.memory_space<vmem>>, vector<384x512xbf16>
    %cst_10 = arith.constant dense<0.000000e+00> : vector<8x512xf32>
    %13 = tpu.matmul %1, %12, %cst_10 {dimension_numbers = #tpu.dot_dimension_numbers<[1], [0], [0], [1], [0, 0, 1, 1], [], []>} : vector<8x384xbf16>, vector<384x512xbf16>, vector<8x512xf32> -> vector<8x512xf32>
    %c0_11 = arith.constant 0 : index
    %c512_12 = arith.constant 512 : index
    %14 = vector.load %arg4[%c0_11, %c512_12] : memref<1x1536xf32, #tpu.memory_space<vmem>>, vector<1x512xf32>
    %15 = vector.broadcast %14 : vector<1x512xf32> to vector<8x512xf32>
    %16 = arith.addf %13, %15 : vector<8x512xf32>
    %cst_13 = arith.constant 0.000000e+00 : f32
    %17 = vector.broadcast %cst_13 : f32 to vector<8x512xf32>
    %18 = arith.maximumf %16, %17 : vector<8x512xf32>
    %19 = arith.truncf %18 : vector<8x512xf32> to vector<8x512xbf16>
    %c512_14 = arith.constant 512 : index
    %c0_15 = arith.constant 0 : index
    %20 = vector.load %arg5[%c512_14, %c0_15] : memref<1536x384xbf16, #tpu.memory_space<vmem>>, vector<512x384xbf16>
    %cst_16 = arith.constant dense<0.000000e+00> : vector<8x384xf32>
    %21 = tpu.matmul %19, %20, %cst_16 {dimension_numbers = #tpu.dot_dimension_numbers<[1], [0], [0], [1], [0, 0, 1, 1], [], []>} : vector<8x512xbf16>, vector<512x384xbf16>, vector<8x384xf32> -> vector<8x384xf32>
    %22 = arith.addf %11, %21 : vector<8x384xf32>
    %c0_17 = arith.constant 0 : index
    %c1024 = arith.constant 1024 : index
    %23 = vector.load %arg3[%c0_17, %c1024] : memref<384x1536xbf16, #tpu.memory_space<vmem>>, vector<384x512xbf16>
    %cst_18 = arith.constant dense<0.000000e+00> : vector<8x512xf32>
    %24 = tpu.matmul %1, %23, %cst_18 {dimension_numbers = #tpu.dot_dimension_numbers<[1], [0], [0], [1], [0, 0, 1, 1], [], []>} : vector<8x384xbf16>, vector<384x512xbf16>, vector<8x512xf32> -> vector<8x512xf32>
    %c0_19 = arith.constant 0 : index
    %c1024_20 = arith.constant 1024 : index
    %25 = vector.load %arg4[%c0_19, %c1024_20] : memref<1x1536xf32, #tpu.memory_space<vmem>>, vector<1x512xf32>
    %26 = vector.broadcast %25 : vector<1x512xf32> to vector<8x512xf32>
    %27 = arith.addf %24, %26 : vector<8x512xf32>
    %cst_21 = arith.constant 0.000000e+00 : f32
    %28 = vector.broadcast %cst_21 : f32 to vector<8x512xf32>
    %29 = arith.maximumf %27, %28 : vector<8x512xf32>
    %30 = arith.truncf %29 : vector<8x512xf32> to vector<8x512xbf16>
    %c1024_22 = arith.constant 1024 : index
    %c0_23 = arith.constant 0 : index
    %31 = vector.load %arg5[%c1024_22, %c0_23] : memref<1536x384xbf16, #tpu.memory_space<vmem>>, vector<512x384xbf16>
    %cst_24 = arith.constant dense<0.000000e+00> : vector<8x384xf32>
    %32 = tpu.matmul %30, %31, %cst_24 {dimension_numbers = #tpu.dot_dimension_numbers<[1], [0], [0], [1], [0, 0, 1, 1], [], []>} : vector<8x512xbf16>, vector<512x384xbf16>, vector<8x384xf32> -> vector<8x384xf32>
    %33 = arith.addf %22, %32 : vector<8x384xf32>
    %c0_25 = arith.constant 0 : index
    %c0_26 = arith.constant 0 : index
    %34 = vector.load %arg6[%c0_25, %c0_26] : memref<1x384xf32, #tpu.memory_space<vmem>>, vector<1x384xf32>
    %35 = vector.broadcast %34 : vector<1x384xf32> to vector<8x384xf32>
    %36 = arith.addf %33, %35 : vector<8x384xf32>
    %c0_27 = arith.constant 0 : index
    %c0_28 = arith.constant 0 : index
    %37 = vector.load %arg7[%c0_27, %c0_28] : memref<8x384xf32, #tpu.memory_space<vmem>>, vector<8x384xf32>
    tpu.vector_store %arg7[%c0_27, %c0_28], %36 {strides = array<i32>} : memref<8x384xf32, #tpu.memory_space<vmem>>, vector<8x384xf32>,
    return
  }
  func.func @transform_0(%arg0: i32, %arg1: memref<1xi32, #tpu.memory_space<smem>>) -> (i32, i32) {
    %c0_i32 = arith.constant 0 : i32
    %c0_i32_0 = arith.constant 0 : i32
    return %arg0, %c0_i32 : i32, i32
  }
  func.func @transform_1(%arg0: i32, %arg1: memref<1xi32, #tpu.memory_space<smem>>) -> (i32, i32) {
    %c0_i32 = arith.constant 0 : i32
    %c0_i32_0 = arith.constant 0 : i32
    %c0_i32_1 = arith.constant 0 : i32
    return %c0_i32, %c0_i32_0 : i32, i32
  }
  func.func @transform_2(%arg0: i32, %arg1: memref<1xi32, #tpu.memory_space<smem>>) -> (i32, i32) {
    %c0_i32 = arith.constant 0 : i32
    %c0_i32_0 = arith.constant 0 : i32
    %c0_i32_1 = arith.constant 0 : i32
    return %c0_i32, %c0_i32_0 : i32, i32
  }
  func.func @transform_3(%arg0: i32, %arg1: memref<1xi32, #tpu.memory_space<smem>>) -> (i32, i32) {
    %c0_i32 = arith.constant 0 : i32
    %c0_i32_0 = arith.constant 0 : i32
    %c0_i32_1 = arith.constant 0 : i32
    return %c0_i32, %c0_i32_0 : i32, i32
  }
  func.func @transform_4(%arg0: i32, %arg1: memref<1xi32, #tpu.memory_space<smem>>) -> (i32, i32) {
    %c0_i32 = arith.constant 0 : i32
    %c0_i32_0 = arith.constant 0 : i32
    %c0_i32_1 = arith.constant 0 : i32
    return %c0_i32, %c0_i32_0 : i32, i32
  }
  func.func @transform_5(%arg0: i32, %arg1: memref<1xi32, #tpu.memory_space<smem>>) -> (i32, i32) {
    %c0_i32 = arith.constant 0 : i32
    %c0_i32_0 = arith.constant 0 : i32
    return %arg0, %c0_i32 : i32, i32
  }
}

</mosaic_0001>

<bundles_post_ra>
// kernel: tpu_custom_call.1
= control target key start
LH: loop header
LB: loop body
LE: loop exit
PB: predicated region body
PF: predicated region fallthrough
CT: control target
= control target key end

     0   :  { %12 = vsyncpa [#allocation5], 0  ;;  %s7383_s0 = inlined_call_operand.<no memory space> [shape: s32[1], index: 0, kind: input, shape index: {}]   ;;  %s7384_s1 = inlined_call_operand.hbm [shape: f32[16,384], index: 1, kind: input, shape index: {}]   ;;  %s7385_s2 = inlined_call_operand.hbm [shape: bf16[384,1536], index: 2, kind: input, shape index: {}]   ;;  %s7386_s3 = inlined_call_operand.hbm [shape: f32[1,1536], index: 3, kind: input, shape index: {}]   ;;  %s7387_s4 = inlined_call_operand.hbm [shape: bf16[1536,384], index: 4, kind: input, shape index: {}]   ;;  %s7388_s5 = inlined_call_operand.hbm [shape: f32[1,384], index: 5, kind: input, shape index: {}]   ;;  %s7389_s6 = inlined_call_operand.hbm [shape: f32[16,384], index: 6, kind: output, shape index: {}]  }
   0x1   :  { %14 = vsyncpa [#allocation5 + $0x1], 0 }
   0x2   :  { %15 = vsyncpa [#allocation8], 0 }
   0x3   :  { %16 = vsyncpa [#allocation11], 0 }
   0x4   :  { %17 = vsyncpa [#allocation6], 0 }
   0x5   :  { %19 = vsyncpa [#allocation6 + $0x1], 0  ;;  %s7057_s0 = smov 0   ;;  %s7059_s21 = smov 0  }
   0x6   :  { %s7061_s22 = smov 0   ;;  %s7063_s23 = smov 0  }
   0x7 LB: > { %s7011_s24 = smov [#allocation7]   ;;  %s7078_s26 = sadd.s32 4294967295, %s7009_s23   ;;  %s7009_s23 = sphi %s7063_s23, %s7412_s23   ;;  %s7005_s22 = sphi %s7061_s22, %s7411_s22   ;;  %s7001_s21 = sphi %s7059_s21, %s7410_s21   ;;  %s6997_s0 = sphi %s7057_s0, %s7409_s0  }
   0x8   : > { %s178_s25 = sshll.u32 %s7011_s24, 4  ;;  %p5170_p0 = scmp.ge.s32.totalorder %s7009_s23, 1  ;;  %s179_s25 = int_to_ptr.vmem [resolvable:$true] %s178_s25 }
   0x9   : > { %p7390_p1 = scmp.eq.s32.totalorder %s7078_s26, 0  ;;  %p166_p2 = scmp.lt.s32.totalorder %s7009_s23, 3 }
   0xa   : > { %s7012_s28 = smov [#allocation10]   ;;  %s7013_s7 = smov [#allocation9]  }
   0xb   : > { %p7083_p3 = pnand %p5170_p0, %p166_p2  ;;  %s202_s29 = sshll.u32 %s7012_s28, 4  ;;  %s7096_s29 = int_to_ptr.vmem [resolvable:$true] %s202_s29 }
   0xc   : > { %s7098_s8 = sshll.u32 %s7013_s7, 4  ;;  %s6816_s9 = scalar_lea.vmem %s179_s25, 36864  ;;  %s193_s8 = int_to_ptr.vmem [resolvable:$true] %s7098_s8 }
   0xd   : > { %s7394_s27 = scalar_select %p7083_p3, 1, 0 }
   0xe   : > { %p5917_p5 = pneg %p7083_p3  ;;  %p6817_p8 = scmp.ne.s32.totalorder %s179_s25, %s6816_s9 }
   0xf   : > { %p6824_p11 = scmp.lt.s32.totalorder %s179_s25, %s179_s25  ;;  %p6825_p12 = scmp.lt.s32.totalorder %s6816_s9, %s6816_s9 }
  0x10   : > { %p7092_p6 = pnand %p5917_p5, %p7390_p1 }
  0x11   : > { %p6826_p13 = por %p6825_p12, %p6824_p11 }
  0x12   : > { %p6807_p7 = pneg %p7092_p6 }
  0x14   : > { %p6819_p9 = pnand %p6817_p8, %p6807_p7 }
  0x16   : > { %p6820_p10 = pneg %p6819_p9 }
  0x18   : > { %p6827_p0 = pnand %p6826_p13, %p6820_p10 }
  0x1a   : > { %6830 = shalt.err (!%p6827_p0)
}
  0x1b   : > { %s7014_s10 = smov 768   ;;  %s7015_s11 = smov 48  }
  0x1c   : > { %5920 = dma.hbm_to_vmem [thread:$0]  (!%p7092_p6), %s7385_s2, 36864, %s179_s25, [#allocation8], %s7014_s10, %s7014_s10, %s7015_s11  }
  0x1d   : > { %s6842_s14 = scalar_lea.vmem %s7096_s29, 36864  ;;  %p6850_p9 = scmp.lt.s32.totalorder %s7096_s29, %s7096_s29 }
  0x1e   : > { %p6843_p2 = scmp.ne.s32.totalorder %s7096_s29, %s6842_s14  ;;  %p6851_p10 = scmp.lt.s32.totalorder %s6842_s14, %s6842_s14 }
  0x20   : > { %p6845_p5 = pnand %p6843_p2, %p6807_p7  ;;  %p6852_p11 = por %p6851_p10, %p6850_p9 }
  0x22   : > { %p6846_p8 = pneg %p6845_p5 }
  0x24   : > { %p6853_p12 = pnand %p6852_p11, %p6846_p8 }
  0x26   : > { %6856 = shalt.err (!%p6853_p12)
}
  0x27   : > { %s7016_s15 = smov 192   ;;  %s7017_s16 = smov 12  }
  0x28   : > { %5926 = dma.hbm_to_vmem [thread:$0]  (!%p7092_p6), %s7387_s4, 36864, %s7096_s29, [#allocation11], %s7016_s15, %s7016_s15, %s7017_s16  }
  0x29   : > { %s6868_s19 = scalar_lea.vmem %s193_s8, 192  ;;  %p6876_p5 = scmp.lt.s32.totalorder %s193_s8, %s193_s8 }
  0x2a   : > { %p6869_p13 = scmp.ne.s32.totalorder %s193_s8, %s6868_s19  ;;  %p6877_p8 = scmp.lt.s32.totalorder %s6868_s19, %s6868_s19 }
  0x2c   : > { %p6871_p0 = pnand %p6869_p13, %p6807_p7  ;;  %p6878_p9 = por %p6877_p8, %p6876_p5 }
  0x2e   : > { %p6872_p2 = pneg %p6871_p0 }
  0x30   : > { %p6879_p10 = pnand %p6878_p9, %p6872_p2 }
  0x32   : > { %6882 = shalt.err (!%p6879_p10)
}
  0x33   : > { %5923 = dma.hbm_to_vmem [thread:$0]  (!%p7092_p6), %s7386_s3, 192, %s193_s8, [#allocation8]  }
  0x34   : > { %s7018_s25 = smov [#allocation12]  }
  0x35   : > { %s216_s28 = sshll.u32 %s7018_s25, 4  ;;  %s217_s28 = int_to_ptr.vmem [resolvable:$true] %s216_s28 }
  0x36   : > { %s6894_s29 = scalar_lea.vmem %s217_s28, 48  ;;  %s6901_s7 = scalar_lea.vmem %s217_s28, 64 }
  0x37   : > { %p6895_p11 = scmp.ne.s32.totalorder %s217_s28, %s6894_s29  ;;  %p6902_p0 = scmp.lt.s32.totalorder %s217_s28, %s217_s28 }
  0x38   : > { %p6903_p2 = scmp.lt.s32.totalorder %s6901_s7, %s6894_s29 }
  0x39   : > { %p6897_p12 = pnand %p6895_p11, %p6807_p7 }
  0x3a   : > { %p6904_p5 = por %p6903_p2, %p6902_p0 }
  0x3b   : > { %p6898_p13 = pneg %p6897_p12 }
  0x3d   : > { %p6905_p8 = pnand %p6904_p5, %p6898_p13 }
  0x3f   : > { %6908 = shalt.err (!%p6905_p8)
}
  0x40   : > { %5929 = dma.hbm_to_vmem [thread:$0]  (!%p7092_p6), %s7388_s5, 48, %s217_s28, [#allocation11]  }
  0x41   : > { %s5169_s8 = sadd.s32 4294967294, %s7009_s23   ;;  %s7142_s30 = sadd.s32 1, %s7009_s23  }
  0x42   : > { %s29_s11 = ssub.s32 %s7009_s23, %s7142_s30  ;;  %s32_s12 = sadd.s32 1, %s7005_s22 }
  0x43   : > { %p30_p7 = scmp.eq.s32.totalorder %s29_s11, 0  ;;  %p39_p9 = scmp.ne.s32.totalorder %s7005_s22, %s7001_s21 }
  0x44   : > { %p40_p10 = scmp.eq.s32.totalorder %s7009_s23, 0  ;;  %p45_p11 = scmp.ne.s32.totalorder %s7001_s21, %s6997_s0 }
  0x45   : > { %s7153_s13 = scalar_select %p30_p7, %s7005_s22, %s32_s12  }
  0x46   : > { %p41_p12 = por %p40_p10, %p39_p9  ;;  %p7157_p13 = por %p7390_p1, %p45_p11 }
  0x47   : > { %p153_p6 = scmp.eq.s32.totalorder %s7078_s26, 1  ;;  %p159_p0 = scmp.eq.s32.totalorder %s5169_s8, 1 }
  0x48   : > { %s7396_s14 = scalar_select %p7157_p13, 1, 0 }
  0x49   : > { %p5942_p2 = scmp.lt.s32.totalorder %s7009_s23, 2  ;;  %s227_s15 = sand.u32 1, %s7005_s22  }
  0x4a   : > { %p7164_p5 = por %p153_p6, %p39_p9  ;;  %p7168_p8 = por %p159_p0, %p45_p11 }
  0x4b   : > { %s5893_s18 = smul.u32 24, %s227_s15  ;;  %p7173_p7 = pnand %p5942_p2, %p41_p12 }
  0x4c   : > { %s7397_s16 = scalar_select %p7164_p5, 1, 0 }
  0x4d   : > { %s7398_s17 = scalar_select %p7168_p8, 1, 0 }
  0x4e   : > { %s5894_s19 = smul.u32 384, %s7009_s23  ;;  %s231_s29 = scalar_lea.vmem [#allocation4], %s5893_s18 }
  0x4f   : > { %s239_s7 = sshll.u32 %s231_s29, 4  ;;  %s228_s9 = scalar_lea.sflag [#allocation5], %s227_s15  ;;  %s240_s7 = int_to_ptr.vmem [resolvable:$true] %s239_s7 }
  0x50   : > { %s7180_s28 = scalar_lea.hbm %s7384_s1, %s5894_s19  ;;  %p6911_p10 = pneg %p7173_p7 }
  0x51   : > { %s6909_s10 = scalar_lea.hbm %s7180_s28, 384  ;;  %s6914_s12 = scalar_lea.hbm %s7384_s1, 768 }
  0x52   : > { %p6910_p9 = scmp.ne.s32.totalorder %s7180_s28, %s6909_s10  ;;  %p6915_p6 = scmp.lt.s32.totalorder %s7180_s28, %s7384_s1 }
  0x53   : > { %p6916_p0 = scmp.lt.s32.totalorder %s6914_s12, %s6909_s10 }
  0x54   : > { %p6912_p11 = pnand %p6911_p10, %p6910_p9 }
  0x55   : > { %p6917_p2 = por %p6916_p0, %p6915_p6 }
  0x56   : > { %p6913_p12 = pneg %p6912_p11 }
  0x58   : > { %p6918_p4 = pnand %p6917_p2, %p6913_p12 }
  0x5a   : > { %6921 = shalt.err (!%p6918_p4)
}
  0x5b   : > { %s6922_s18 = scalar_lea.vmem %s240_s7, 384  ;;  %s7019_s15 = smov [#allocation4]  }
  0x5c   : > { %p6923_p1 = scmp.ne.s32.totalorder %s240_s7, %s6922_s18  ;;  %s6927_s25 = sshll.u32 %s7019_s15, 4  ;;  %s6928_s25 = int_to_ptr.vmem [resolvable:$false] %s6927_s25 }
  0x5d   : > { %s6929_s29 = scalar_lea.vmem %s6928_s25, 768  ;;  %p6930_p9 = scmp.lt.s32.totalorder %s240_s7, %s6928_s25 }
  0x5e   : > { %p6925_p8 = pnand %p6923_p1, %p6911_p10  ;;  %p6931_p11 = scmp.lt.s32.totalorder %s6929_s29, %s6922_s18 }
  0x60   : > { %p6926_p5 = pneg %p6925_p8  ;;  %p6932_p13 = por %p6931_p11, %p6930_p9 }
  0x62   : > { %p6933_p3 = pnand %p6932_p13, %p6926_p5 }
  0x64   : > { %6936 = shalt.err (!%p6933_p3)
}
  0x65   : > { %5933 = dma.hbm_to_vmem [thread:$0]  (!%p7173_p7), %s7180_s28, 384, %s240_s7, %s228_s9  }
  0x66   : > { %p7400_p12 = scmp.ne.s32.totalorder %s7394_s27, 0 }
  0x67   : > { %s7199_s10 = sand.u32 (!%p7400_p12), 1, %s7001_s21   ;;  %p7401_p1 = scmp.ne.s32.totalorder (!%p7400_p12), %s7396_s14, 0 }
  0x68   : > { %248 = sbr.rel (%p7400_p12) target bundleno = 1190 (0x4a6), region = 40  ;;  %s251_s11 = scalar_lea.sflag (!%p7400_p12), [#allocation5], %s7199_s10 }
  0x69   : > { %s5895_s8 = smul.u32 (!%p7400_p12), 24, %s7199_s10 }
  0x6b   : > { %s7205_s12 = scalar_lea.vmem (!%p7400_p12), [#allocation4], %s5895_s8 }
  0x6d   : > { %6980 = dma.done.wait (%p7401_p1), %s251_s11, 384  }
  0x6e   : > { %6982 = vsyncadd (%p7401_p1), %s251_s11, 4294966912  ;;  %p7402_p3 = scmp.eq.s32.totalorder %s7078_s26, 0 }
  0x70   : > { %6984 = dma.done.wait (%p7402_p3), [#allocation8], 37056   ;;  %p7403_p4 = pmov %p7402_p3 }
  0x71   : > { %p7404_p13 = pmov %p7402_p3 }
  0x72   : > { %6986 = vsyncadd (%p7403_p4), [#allocation8], 4294930240 }
  0x73   : > { %6988 = dma.done.wait (%p7404_p13), [#allocation11], 36912   ;;  %p7405_p5 = pmov %p7402_p3 }
  0x74   : > { %v7020_v0 = vmov 0   ;;  %v5989_v1 = vld [vmem:[#allocation7 + $0x2a4] ss:$48 sps:$4 sm:$0xff]   ;;  %v5993_v3 = vld [vmem:[#allocation7 + $0x2a0] ss:$48 sps:$4 sm:$0xff]   ;;  %s296_s27 = scalar_lea.vmem [#allocation13], %s5895_s8 }
  0x75   : > { %6990 = vsyncadd (%p7405_p5), [#allocation11], 4294930384  ;;  %975 = vmatprep.mubr.bf16.mxu1 %v7020_v0  ;;  %v5991_v2 = vld [vmem:[#allocation7 + $0x8a4] ss:$48 sps:$4 sm:$0xff]   ;;  %902 = vmatprep.subr.bf16.mxu0 %v5989_v1  ;;  %v5994_v4 = vld [vmem:[#allocation7 + $0x8a0] ss:$48 sps:$4 sm:$0xff]  }
  0x76   : > { %943 = vmatprep.subr.bf16.mxu1 %v5991_v2  ;;  %v5995_v5 = vld [vmem:[#allocation7 + $0x244] ss:$48 sps:$4 sm:$0xff]   ;;  %903 = vmatpush1.bf16.msra.mxu0 %v5993_v3  ;;  %v5999_v7 = vld [vmem:[#allocation7 + $0x240] ss:$48 sps:$4 sm:$0xff]   ;;  %v6041_v35 = vld [vmem:[#allocation7 + $0x2ac] ss:$48 sps:$4 sm:$0xff]  }
  0x77   : > { %944 = vmatpush1.bf16.msra.mxu1 %v5994_v4  ;;  %v5997_v6 = vld [vmem:[#allocation7 + $0x844] ss:$48 sps:$4 sm:$0xff]   ;;  %904 = vmatprep.subr.bf16.mxu0 %v5995_v5  ;;  %v6000_v8 = vld [vmem:[#allocation7 + $0x840] ss:$48 sps:$4 sm:$0xff]   ;;  %v6039_v37 = vld [vmem:[#allocation7 + $0x2a8] ss:$48 sps:$4 sm:$0xff]  }
  0x78   : > { %945 = vmatprep.subr.bf16.mxu1 %v5997_v6  ;;  %v6001_v9 = vld [vmem:[#allocation7 + $0x1e4] ss:$48 sps:$4 sm:$0xff]   ;;  %v6005_v11 = vld [vmem:[#allocation7 + $0x1e0] ss:$48 sps:$4 sm:$0xff]   ;;  %v6047_v40 = vld [vmem:[#allocation7 + $0x24c] ss:$48 sps:$4 sm:$0xff]  }
  0x79   : > { %v6003_v10 = vld [vmem:[#allocation7 + $0x7e4] ss:$48 sps:$4 sm:$0xff]   ;;  %v6006_v12 = vld [vmem:[#allocation7 + $0x7e0] ss:$48 sps:$4 sm:$0xff]   ;;  %v6045_v41 = vld [vmem:[#allocation7 + $0x248] ss:$48 sps:$4 sm:$0xff]  }
  0x7a   : > { %905 = vmatpush1.bf16.msra.mxu0 %v5999_v7  ;;  %v6007_v13 = vld [vmem:[#allocation7 + $0x184] ss:$48 sps:$4 sm:$0xff]   ;;  %v6011_v15 = vld [vmem:[#allocation7 + $0x180] ss:$48 sps:$4 sm:$0xff]   ;;  %v6053_v44 = vld [vmem:[#allocation7 + $0x1ec] ss:$48 sps:$4 sm:$0xff]  }
  0x7b   : > { %946 = vmatpush1.bf16.msra.mxu1 %v6000_v8  ;;  %906 = vmatprep.subr.bf16.mxu0 %v6001_v9  ;;  %v6009_v14 = vld [vmem:[#allocation7 + $0x784] ss:$48 sps:$4 sm:$0xff]   ;;  %v6012_v16 = vld [vmem:[#allocation7 + $0x780] ss:$48 sps:$4 sm:$0xff]   ;;  %v6051_v45 = vld [vmem:[#allocation7 + $0x1e8] ss:$48 sps:$4 sm:$0xff]  }
  0x7c   : > { %947 = vmatprep.subr.bf16.mxu1 %v6003_v10  ;;  %v6013_v17 = vld [vmem:[#allocation7 + $0x124] ss:$48 sps:$4 sm:$0xff]   ;;  %v6017_v19 = vld [vmem:[#allocation7 + $0x120] ss:$48 sps:$4 sm:$0xff]   ;;  %v6059_v48 = vld [vmem:[#allocation7 + $0x18c] ss:$48 sps:$4 sm:$0xff]  }
  0x7d   : > { %v6015_v18 = vld [vmem:[#allocation7 + $0x724] ss:$48 sps:$4 sm:$0xff]   ;;  %v6018_v20 = vld [vmem:[#allocation7 + $0x720] ss:$48 sps:$4 sm:$0xff]   ;;  %v6057_v49 = vld [vmem:[#allocation7 + $0x188] ss:$48 sps:$4 sm:$0xff]  }
  0x7e   : > { %907 = vmatpush1.bf16.msra.mxu0 %v6005_v11  ;;  %v6019_v21 = vld [vmem:[#allocation7 + $0xc4] ss:$48 sps:$4 sm:$0xff]   ;;  %v6023_v23 = vld [vmem:[#allocation7 + $0xc0] ss:$48 sps:$4 sm:$0xff]   ;;  %v6065_v54 = vld [vmem:[#allocation7 + $0x12c] ss:$48 sps:$4 sm:$0xff]  }
  0x7f   : > { %948 = vmatpush1.bf16.msra.mxu1 %v6006_v12  ;;  %908 = vmatprep.subr.bf16.mxu0 %v6007_v13  ;;  %v6021_v22 = vld [vmem:[#allocation7 + $0x6c4] ss:$48 sps:$4 sm:$0xff]   ;;  %v6024_v24 = vld [vmem:[#allocation7 + $0x6c0] ss:$48 sps:$4 sm:$0xff]   ;;  %v6063_v55 = vld [vmem:[#allocation7 + $0x128] ss:$48 sps:$4 sm:$0xff]  }
  0x80   : > { %949 = vmatprep.subr.bf16.mxu1 %v6009_v14  ;;  %v6025_v25 = vld [vmem:[#allocation7 + $0x64] ss:$48 sps:$4 sm:$0xff]   ;;  %v6029_v27 = vld [vmem:[#allocation7 + $0x60] ss:$48 sps:$4 sm:$0xff]   ;;  %v6071_v58 = vld [vmem:[#allocation7 + $0xcc] ss:$48 sps:$4 sm:$0xff]  }
  0x81   : > { %v6027_v26 = vld [vmem:[#allocation7 + $0x664] ss:$48 sps:$4 sm:$0xff]   ;;  %v6030_v28 = vld [vmem:[#allocation7 + $0x660] ss:$48 sps:$4 sm:$0xff]   ;;  %v6069_v59 = vld [vmem:[#allocation7 + $0xc8] ss:$48 sps:$4 sm:$0xff]  }
  0x82   : > { %909 = vmatpush1.bf16.msra.mxu0 %v6011_v15  ;;  %v6031_v29 = vld [vmem:[#allocation7 + $0x4] ss:$48 sps:$4 sm:$0xff]   ;;  %v6035_v31 = vld [vmem:[#allocation7] ss:$48 sps:$4 sm:$0xff]   ;;  %v6077_v62 = vld [vmem:[#allocation7 + $0x6c] ss:$48 sps:$4 sm:$0xff]  }
  0x83   : > { %950 = vmatpush1.bf16.msra.mxu1 %v6012_v16  ;;  %910 = vmatprep.subr.bf16.mxu0 %v6013_v17  ;;  %v6033_v30 = vld [vmem:[#allocation7 + $0x604] ss:$48 sps:$4 sm:$0xff]   ;;  %v6036_v32 = vld [vmem:[#allocation7 + $0x600] ss:$48 sps:$4 sm:$0xff]   ;;  %v6075_v63 = vld [vmem:[#allocation7 + $0x68] ss:$48 sps:$4 sm:$0xff]  }
  0x84   : > { %951 = vmatprep.subr.bf16.mxu1 %v6015_v18  ;;  %v300_v33 = vld [vmem:[%s7205_s12 + $0x10] sm:$0xff]  ;;  %v299_v50 = vld [vmem:[%s7205_s12 + $0x8] sm:$0xff]  ;;  %v298_v6 = vld [vmem:[%s7205_s12] sm:$0xff]  ;;  %s5896_s14 = smul.u32 384, %s7078_s26  ;;  %s5061_s20 = sshll.u32 %s296_s27, 4  ;;  %s5062_s20 = int_to_ptr.vmem [resolvable:$true] %s5061_s20 }
  0x85   : > { %v6037_v34 = vld [vmem:[#allocation7 + $0x5a4] ss:$48 sps:$4 sm:$0xff]   ;;  %v7221_v36 = vpack.c.bf16 %v300_v33, %v300_v33  ;;  %v6042_v38 = vld [vmem:[#allocation7 + $0x5a0] ss:$48 sps:$4 sm:$0xff]   ;;  %v7225_v53 = vpack.c.bf16 %v299_v50, %v299_v50  ;;  %v6083_v3 = vld [vmem:[#allocation7 + $0xc] ss:$48 sps:$4 sm:$0xff]   ;;  %v7230_v9 = vpack.c.bf16 %v298_v6, %v298_v6 }
  0x86   : > { %911 = vmatpush1.bf16.msra.mxu0 %v6017_v19  ;;  %v6043_v39 = vld [vmem:[#allocation7 + $0x544] ss:$48 sps:$4 sm:$0xff]   ;;  %v6048_v42 = vld [vmem:[#allocation7 + $0x540] ss:$48 sps:$4 sm:$0xff]   ;;  %v6081_v4 = vld [vmem:[#allocation7 + $0x8] ss:$48 sps:$4 sm:$0xff]   ;;  %s5059_s9 = scalar_lea.hbm %s7389_s6, %s5896_s14 }
  0x87   : > { %952 = vmatpush1.bf16.msra.mxu1 %v6018_v20  ;;  %912 = vmatprep.subr.bf16.mxu0 %v6019_v21  ;;  %v6049_v43 = vld [vmem:[#allocation7 + $0x4e4] ss:$48 sps:$4 sm:$0xff]   ;;  %v6054_v46 = vld [vmem:[#allocation7 + $0x4e0] ss:$48 sps:$4 sm:$0xff]   ;;  %v6087_v7 = vld [vmem:[#allocation7 + $0x5ac] ss:$48 sps:$4 sm:$0xff]  }
  0x88   : > { %953 = vmatprep.subr.bf16.mxu1 %v6021_v22  ;;  %v6055_v47 = vld [vmem:[#allocation7 + $0x484] ss:$48 sps:$4 sm:$0xff]   ;;  %v6060_v51 = vld [vmem:[#allocation7 + $0x480] ss:$48 sps:$4 sm:$0xff]   ;;  %934 = vmatprep.mubr.bf16.mxu0 %v7225_v53  ;;  %v6090_v8 = vld [vmem:[#allocation7 + $0x8ac] ss:$48 sps:$4 sm:$0xff]  }
  0x89   : > { %v6061_v52 = vld [vmem:[#allocation7 + $0x424] ss:$48 sps:$4 sm:$0xff]   ;;  %v6066_v56 = vld [vmem:[#allocation7 + $0x420] ss:$48 sps:$4 sm:$0xff]   ;;  %v6085_v10 = vld [vmem:[#allocation7 + $0x5a8] ss:$48 sps:$4 sm:$0xff]  }
  0x8a   : > { %913 = vmatpush1.bf16.msra.mxu0 %v6023_v23  ;;  %v6067_v57 = vld [vmem:[#allocation7 + $0x3c4] ss:$48 sps:$4 sm:$0xff]   ;;  %v6072_v60 = vld [vmem:[#allocation7 + $0x3c0] ss:$48 sps:$4 sm:$0xff]   ;;  %v6088_v11 = vld [vmem:[#allocation7 + $0x8a8] ss:$48 sps:$4 sm:$0xff]  }
  0x8b   : > { %954 = vmatpush1.bf16.msra.mxu1 %v6024_v24  ;;  %914 = vmatprep.subr.bf16.mxu0 %v6025_v25  ;;  %v6073_v61 = vld [vmem:[#allocation7 + $0x364] ss:$48 sps:$4 sm:$0xff]   ;;  %v6078_v1 = vld [vmem:[#allocation7 + $0x360] ss:$48 sps:$4 sm:$0xff]   ;;  %v6093_v12 = vld [vmem:[#allocation7 + $0x54c] ss:$48 sps:$4 sm:$0xff]  }
  0x8c   : > { %955 = vmatprep.subr.bf16.mxu1 %v6027_v26  ;;  %v6079_v2 = vld [vmem:[#allocation7 + $0x304] ss:$48 sps:$4 sm:$0xff]   ;;  %v6084_v5 = vld [vmem:[#allocation7 + $0x300] ss:$48 sps:$4 sm:$0xff]   ;;  %v6096_v13 = vld [vmem:[#allocation7 + $0x84c] ss:$48 sps:$4 sm:$0xff]  }
  0x8d   : > { %v6091_v14 = vld [vmem:[#allocation7 + $0x548] ss:$48 sps:$4 sm:$0xff]   ;;  %v6099_v16 = vld [vmem:[#allocation7 + $0x4ec] ss:$48 sps:$4 sm:$0xff]   ;;  %v6150_v50 = vld [vmem:[#allocation7 + $0x7f4] ss:$48 sps:$4 sm:$0xff]  }
  0x8e   : > { %915 = vmatpush1.bf16.msra.mxu0 %v6029_v27  ;;  %v6094_v15 = vld [vmem:[#allocation7 + $0x848] ss:$48 sps:$4 sm:$0xff]   ;;  %v6102_v17 = vld [vmem:[#allocation7 + $0x7ec] ss:$48 sps:$4 sm:$0xff]   ;;  %v6172_v6 = vld [vmem:[#allocation7 + $0x670] ss:$48 sps:$4 sm:$0xff]  }
  0x8f   : > { %956 = vmatpush1.bf16.msra.mxu1 %v6030_v28  ;;  %916 = vmatprep.subr.bf16.mxu0 %v6031_v29  ;;  %v6097_v18 = vld [vmem:[#allocation7 + $0x4e8] ss:$48 sps:$4 sm:$0xff]   ;;  %v6105_v20 = vld [vmem:[#allocation7 + $0x48c] ss:$48 sps:$4 sm:$0xff]   ;;  %s5047_s24 = scalar_lea.sflag [#allocation6], %s7199_s10  ;;  %s6937_s19 = scalar_lea.vmem %s5062_s20, 384 }
  0x90   : > { %957 = vmatprep.subr.bf16.mxu1 %v6033_v30  ;;  %v6100_v19 = vld [vmem:[#allocation7 + $0x7e8] ss:$48 sps:$4 sm:$0xff]   ;;  %v6108_v21 = vld [vmem:[#allocation7 + $0x78c] ss:$48 sps:$4 sm:$0xff]   ;;  %p6938_p8 = scmp.ne.s32.totalorder %s5062_s20, %s6937_s19  ;;  %p7406_p7 = scmp.ne.s32.totalorder %s7397_s16, 0 }
  0x91   : > { %v6103_v22 = vld [vmem:[#allocation7 + $0x488] ss:$48 sps:$4 sm:$0xff]   ;;  %v6111_v24 = vld [vmem:[#allocation7 + $0x42c] ss:$48 sps:$4 sm:$0xff]   ;;  %s7021_s18 = smov [#allocation13]  }
  0x92   : > { %917 = vmatpush1.bf16.msra.mxu0 %v6035_v31  ;;  %v6106_v23 = vld [vmem:[#allocation7 + $0x788] ss:$48 sps:$4 sm:$0xff]   ;;  %v6114_v25 = vld [vmem:[#allocation7 + $0x72c] ss:$48 sps:$4 sm:$0xff]   ;;  %p6939_p10 = pnand %p6938_p8, %p7406_p7  ;;  %s6941_s15 = sshll.u32 %s7021_s18, 4  ;;  %s6942_s15 = int_to_ptr.vmem [resolvable:$false] %s6941_s15 }
  0x93   : > { %958 = vmatpush1.bf16.msra.mxu1 %v6036_v32  ;;  %918 = vmatprep.subr.bf16.mxu0 %v6037_v34  ;;  %v6109_v26 = vld [vmem:[#allocation7 + $0x428] ss:$48 sps:$4 sm:$0xff]   ;;  %v6117_v28 = vld [vmem:[#allocation7 + $0x3cc] ss:$48 sps:$4 sm:$0xff]   ;;  %s6943_s26 = scalar_lea.vmem %s6942_s15, 768  ;;  %p6944_p0 = scmp.lt.s32.totalorder %s5062_s20, %s6942_s15 }
  0x94   : > { %984 = vmatprep.subr.bf16.mxu1 %v6041_v35  ;;  %v6112_v27 = vld [vmem:[#allocation7 + $0x728] ss:$48 sps:$4 sm:$0xff]   ;;  %v6120_v29 = vld [vmem:[#allocation7 + $0x6cc] ss:$48 sps:$4 sm:$0xff]   ;;  %p6940_p6 = pneg %p6939_p10  ;;  %p6945_p2 = scmp.lt.s32.totalorder %s6943_s26, %s6937_s19 }
  0x95   : > { %v6115_v30 = vld [vmem:[#allocation7 + $0x3c8] ss:$48 sps:$4 sm:$0xff]   ;;  %v6123_v32 = vld [vmem:[#allocation7 + $0x36c] ss:$48 sps:$4 sm:$0xff]  }
  0x96   : > { %976 = vmatmul.mubr.bf16.vlgmr.msra.gmra.mxu1 %v7221_v36  ;;  %919 = vmatpush2.bf16.msra.mxu0 %v6042_v38  ;;  %v6118_v31 = vld [vmem:[#allocation7 + $0x6c8] ss:$48 sps:$4 sm:$0xff]   ;;  %v6126_v33 = vld [vmem:[#allocation7 + $0x66c] ss:$48 sps:$4 sm:$0xff]   ;;  %p6946_p9 = por %p6945_p2, %p6944_p0 }
  0x97   : > { %985 = vmatpush1.bf16.msra.mxu1 %v6039_v37  ;;  %920 = vmatprep.subr.bf16.mxu0 %v6043_v39  ;;  %v6121_v34 = vld [vmem:[#allocation7 + $0x368] ss:$48 sps:$4 sm:$0xff]   ;;  %v6129_v37 = vld [vmem:[#allocation7 + $0x30c] ss:$48 sps:$4 sm:$0xff]  }
  0x98   : > { %986 = vmatprep.subr.bf16.mxu1 %v6047_v40  ;;  %1016 = vmatprep.mubr.bf16.mxu1 %v7225_v53  ;;  %v6124_v35 = vld [vmem:[#allocation7 + $0x668] ss:$48 sps:$4 sm:$0xff]   ;;  %v6132_v38 = vld [vmem:[#allocation7 + $0x60c] ss:$48 sps:$4 sm:$0xff]   ;;  %p6947_p11 = pnand %p6946_p9, %p6940_p6 }
  0x99   : > { %v6127_v39 = vld [vmem:[#allocation7 + $0x308] ss:$48 sps:$4 sm:$0xff]  }
  0x9a   : > { %921 = vmatpush2.bf16.msra.mxu0 %v6048_v42  ;;  %v6130_v40 = vld [vmem:[#allocation7 + $0x608] ss:$48 sps:$4 sm:$0xff]   ;;  %v6138_v42 = vld [vmem:[#allocation7 + $0x8b4] ss:$48 sps:$4 sm:$0xff]  }
  0x9b   : > { %987 = vmatpush1.bf16.msra.mxu1 %v6045_v41  ;;  %922 = vmatprep.subr.bf16.mxu0 %v6049_v43  ;;  %v6135_v41 = vld [vmem:[#allocation7 + $0x2b4] ss:$48 sps:$4 sm:$0xff]   ;;  %v6133_v43 = vld [vmem:[#allocation7 + $0x2b0] ss:$48 sps:$4 sm:$0xff]  }
  0x9c   : > { %988 = vmatprep.subr.bf16.mxu1 %v6053_v44  ;;  %v6136_v44 = vld [vmem:[#allocation7 + $0x8b0] ss:$48 sps:$4 sm:$0xff]  }
  0x9e   : > { %923 = vmatpush2.bf16.msra.mxu0 %v6054_v46  ;;  %v6144_v46 = vld [vmem:[#allocation7 + $0x854] ss:$48 sps:$4 sm:$0xff]  }
  0x9f   : > { %989 = vmatpush1.bf16.msra.mxu1 %v6051_v45  ;;  %924 = vmatprep.subr.bf16.mxu0 %v6055_v47  ;;  %v6141_v45 = vld [vmem:[#allocation7 + $0x254] ss:$48 sps:$4 sm:$0xff]   ;;  %v6139_v47 = vld [vmem:[#allocation7 + $0x250] ss:$48 sps:$4 sm:$0xff]  }
  0xa0   : > { %990 = vmatprep.subr.bf16.mxu1 %v6059_v48  ;;  %v6142_v48 = vld [vmem:[#allocation7 + $0x850] ss:$48 sps:$4 sm:$0xff]  }
  0xa2   : > { %925 = vmatpush2.bf16.msra.mxu0 %v6060_v51  ;;  %v6145_v51 = vld [vmem:[#allocation7 + $0x1f0] ss:$48 sps:$4 sm:$0xff]  }
  0xa3   : > { %991 = vmatpush1.bf16.msra.mxu1 %v6057_v49  ;;  %926 = vmatprep.subr.bf16.mxu0 %v6061_v52  ;;  %v6147_v49 = vld [vmem:[#allocation7 + $0x1f4] ss:$48 sps:$4 sm:$0xff]   ;;  %v6148_v52 = vld [vmem:[#allocation7 + $0x7f0] ss:$48 sps:$4 sm:$0xff]  }
  0xa4   : > { %992 = vmatprep.subr.bf16.mxu1 %v6065_v54  ;;  %v6153_v54 = vld [vmem:[#allocation7 + $0x194] ss:$48 sps:$4 sm:$0xff]  }
  0xa6   : > { %927 = vmatpush2.bf16.msra.mxu0 %v6066_v56  ;;  %v6151_v56 = vld [vmem:[#allocation7 + $0x190] ss:$48 sps:$4 sm:$0xff]  }
  0xa7   : > { %993 = vmatpush1.bf16.msra.mxu1 %v6063_v55  ;;  %928 = vmatprep.subr.bf16.mxu0 %v6067_v57  ;;  %v6156_v55 = vld [vmem:[#allocation7 + $0x794] ss:$48 sps:$4 sm:$0xff]   ;;  %v6154_v57 = vld [vmem:[#allocation7 + $0x790] ss:$48 sps:$4 sm:$0xff]  }
  0xa8   : > { %994 = vmatprep.subr.bf16.mxu1 %v6071_v58  ;;  %v6159_v58 = vld [vmem:[#allocation7 + $0x134] ss:$48 sps:$4 sm:$0xff]  }
  0xaa   : > { %929 = vmatpush2.bf16.msra.mxu0 %v6072_v60  ;;  %v6157_v60 = vld [vmem:[#allocation7 + $0x130] ss:$48 sps:$4 sm:$0xff]  }
  0xab   : > { %995 = vmatpush1.bf16.msra.mxu1 %v6069_v59  ;;  %930 = vmatprep.subr.bf16.mxu0 %v6073_v61  ;;  %v6162_v59 = vld [vmem:[#allocation7 + $0x734] ss:$48 sps:$4 sm:$0xff]   ;;  %v6160_v61 = vld [vmem:[#allocation7 + $0x730] ss:$48 sps:$4 sm:$0xff]  }
  0xac   : > { %996 = vmatprep.subr.bf16.mxu1 %v6077_v62  ;;  %v6165_v62 = vld [vmem:[#allocation7 + $0xd4] ss:$48 sps:$4 sm:$0xff]  }
  0xae   : > { %931 = vmatpush2.bf16.msra.mxu0 %v6078_v1  ;;  %v6163_v1 = vld [vmem:[#allocation7 + $0xd0] ss:$48 sps:$4 sm:$0xff]  }
  0xaf   : > { %997 = vmatpush1.bf16.msra.mxu1 %v6075_v63  ;;  %932 = vmatprep.subr.bf16.mxu0 %v6079_v2  ;;  %v6168_v63 = vld [vmem:[#allocation7 + $0x6d4] ss:$48 sps:$4 sm:$0xff]   ;;  %v6166_v2 = vld [vmem:[#allocation7 + $0x6d0] ss:$48 sps:$4 sm:$0xff]  }
  0xb0   : > { %998 = vmatprep.subr.bf16.mxu1 %v6083_v3  ;;  %v6171_v3 = vld [vmem:[#allocation7 + $0x74] ss:$48 sps:$4 sm:$0xff]  }
  0xb2   : > { %933 = vmatpush2.bf16.msra.mxu0 %v6084_v5  ;;  %v6169_v5 = vld [vmem:[#allocation7 + $0x70] ss:$48 sps:$4 sm:$0xff]  }
  0xb3   : > { %999 = vmatpush1.bf16.msra.mxu1 %v6081_v4  ;;  %1025 = vmatprep.subr.bf16.mxu0 %v6090_v8  ;;  %v6174_v4 = vld [vmem:[#allocation7 + $0x674] ss:$48 sps:$4 sm:$0xff]  }
  0xb4   : > { %1000 = vmatprep.subr.bf16.mxu1 %v6087_v7  ;;  %v6177_v7 = vld [vmem:[#allocation7 + $0x14] ss:$48 sps:$4 sm:$0xff]  }
  0xb5   : > { %935 = vmatmul.mubr.bf16.vlgmr.msra.gmra.mxu0 %v7230_v9  ;;  %v6180_v8 = vld [vmem:[#allocation7 + $0x614] ss:$48 sps:$4 sm:$0xff]  }
  0xb6   : > { %1026 = vmatpush1.bf16.msra.mxu0 %v6088_v11  ;;  %1057 = vmatprep.mubr.bf16.mxu0 %v7020_v0  ;;  %v6178_v11 = vld [vmem:[#allocation7 + $0x610] ss:$48 sps:$4 sm:$0xff]  }
  0xb7   : > { %1001 = vmatpush2.bf16.msra.mxu1 %v6085_v10  ;;  %1027 = vmatprep.subr.bf16.mxu0 %v6096_v13  ;;  %v6175_v10 = vld [vmem:[#allocation7 + $0x10] ss:$48 sps:$4 sm:$0xff]   ;;  %v6186_v13 = vld [vmem:[#allocation7 + $0x2bc] ss:$48 sps:$4 sm:$0xff]  }
  0xb8   : > { %1002 = vmatprep.subr.bf16.mxu1 %v6093_v12  ;;  %v6183_v12 = vld [vmem:[#allocation7 + $0x5b4] ss:$48 sps:$4 sm:$0xff]  }
  0xba   : > { %1028 = vmatpush1.bf16.msra.mxu0 %v6094_v15  ;;  %v6184_v15 = vld [vmem:[#allocation7 + $0x2b8] ss:$48 sps:$4 sm:$0xff]  }
  0xbb   : > { %1003 = vmatpush2.bf16.msra.mxu1 %v6091_v14  ;;  %1029 = vmatprep.subr.bf16.mxu0 %v6102_v17  ;;  %v6181_v14 = vld [vmem:[#allocation7 + $0x5b0] ss:$48 sps:$4 sm:$0xff]   ;;  %v6192_v17 = vld [vmem:[#allocation7 + $0x25c] ss:$48 sps:$4 sm:$0xff]  }
  0xbc   : > { %1004 = vmatprep.subr.bf16.mxu1 %v6099_v16  ;;  %v6189_v16 = vld [vmem:[#allocation7 + $0x554] ss:$48 sps:$4 sm:$0xff]  }
  0xbe   : > { %1030 = vmatpush1.bf16.msra.mxu0 %v6100_v19  ;;  %v6190_v19 = vld [vmem:[#allocation7 + $0x258] ss:$48 sps:$4 sm:$0xff]  }
  0xbf   : > { %1005 = vmatpush2.bf16.msra.mxu1 %v6097_v18  ;;  %1031 = vmatprep.subr.bf16.mxu0 %v6108_v21  ;;  %v6187_v18 = vld [vmem:[#allocation7 + $0x550] ss:$48 sps:$4 sm:$0xff]   ;;  %v6198_v21 = vld [vmem:[#allocation7 + $0x1fc] ss:$48 sps:$4 sm:$0xff]  }
  0xc0   : > { %1006 = vmatprep.subr.bf16.mxu1 %v6105_v20  ;;  %v6195_v20 = vld [vmem:[#allocation7 + $0x4f4] ss:$48 sps:$4 sm:$0xff]  }
  0xc2   : > { %1032 = vmatpush1.bf16.msra.mxu0 %v6106_v23  ;;  %v6196_v23 = vld [vmem:[#allocation7 + $0x1f8] ss:$48 sps:$4 sm:$0xff]  }
  0xc3   : > { %1007 = vmatpush2.bf16.msra.mxu1 %v6103_v22  ;;  %1033 = vmatprep.subr.bf16.mxu0 %v6114_v25  ;;  %v6193_v22 = vld [vmem:[#allocation7 + $0x4f0] ss:$48 sps:$4 sm:$0xff]   ;;  %v6204_v25 = vld [vmem:[#allocation7 + $0x19c] ss:$48 sps:$4 sm:$0xff]  }
  0xc4   : > { %1008 = vmatprep.subr.bf16.mxu1 %v6111_v24  ;;  %v6201_v24 = vld [vmem:[#allocation7 + $0x494] ss:$48 sps:$4 sm:$0xff]  }
  0xc6   : > { %1034 = vmatpush1.bf16.msra.mxu0 %v6112_v27  ;;  %v6202_v27 = vld [vmem:[#allocation7 + $0x198] ss:$48 sps:$4 sm:$0xff]  }
  0xc7   : > { %1009 = vmatpush2.bf16.msra.mxu1 %v6109_v26  ;;  %1035 = vmatprep.subr.bf16.mxu0 %v6120_v29  ;;  %v6199_v26 = vld [vmem:[#allocation7 + $0x490] ss:$48 sps:$4 sm:$0xff]   ;;  %v6210_v29 = vld [vmem:[#allocation7 + $0x13c] ss:$48 sps:$4 sm:$0xff]  }
  0xc8   : > { %1010 = vmatprep.subr.bf16.mxu1 %v6117_v28  ;;  %v6207_v28 = vld [vmem:[#allocation7 + $0x434] ss:$48 sps:$4 sm:$0xff]  }
  0xca   : > { %1036 = vmatpush1.bf16.msra.mxu0 %v6118_v31  ;;  %v6208_v31 = vld [vmem:[#allocation7 + $0x138] ss:$48 sps:$4 sm:$0xff]  }
  0xcb   : > { %1011 = vmatpush2.bf16.msra.mxu1 %v6115_v30  ;;  %1037 = vmatprep.subr.bf16.mxu0 %v6126_v33  ;;  %v6205_v30 = vld [vmem:[#allocation7 + $0x430] ss:$48 sps:$4 sm:$0xff]   ;;  %v6216_v33 = vld [vmem:[#allocation7 + $0xdc] ss:$48 sps:$4 sm:$0xff]  }
  0xcc   : > { %1012 = vmatprep.subr.bf16.mxu1 %v6123_v32  ;;  %v6213_v32 = vld [vmem:[#allocation7 + $0x3d4] ss:$48 sps:$4 sm:$0xff]  }
  0xce   : > { %1038 = vmatpush1.bf16.msra.mxu0 %v6124_v35  ;;  %v6214_v35 = vld [vmem:[#allocation7 + $0xd8] ss:$48 sps:$4 sm:$0xff]  }
  0xcf   : > { %1013 = vmatpush2.bf16.msra.mxu1 %v6121_v34  ;;  %1039 = vmatprep.subr.bf16.mxu0 %v6132_v38  ;;  %v6211_v34 = vld [vmem:[#allocation7 + $0x3d0] ss:$48 sps:$4 sm:$0xff]   ;;  %v6222_v38 = vld [vmem:[#allocation7 + $0x7c] ss:$48 sps:$4 sm:$0xff]  }
  0xd0   : > { %1014 = vmatprep.subr.bf16.mxu1 %v6129_v37  ;;  %v6219_v37 = vld [vmem:[#allocation7 + $0x374] ss:$48 sps:$4 sm:$0xff]  }
  0xd2   : > { %1040 = vmatpush1.bf16.msra.mxu0 %v6130_v40  ;;  %v6220_v40 = vld [vmem:[#allocation7 + $0x78] ss:$48 sps:$4 sm:$0xff]  }
  0xd3   : > { %1015 = vmatpush2.bf16.msra.mxu1 %v6127_v39  ;;  %1800 = vmatprep.subr.bf16.mxu0 %v6135_v41  ;;  %v6217_v39 = vld [vmem:[#allocation7 + $0x370] ss:$48 sps:$4 sm:$0xff]   ;;  %v6225_v41 = vld [vmem:[#allocation7 + $0x314] ss:$48 sps:$4 sm:$0xff]  }
  0xd4   : > { %1841 = vmatprep.subr.bf16.mxu1 %v6138_v42  ;;  %v6228_v42 = vld [vmem:[#allocation7 + $0x1c] ss:$48 sps:$4 sm:$0xff]  }
  0xd5   : > { %1058 = vmatmul.mubr.bf16.vlgmr.msra.gmra.mxu0 %v7221_v36 }
  0xd6   : > { %1017 = vmatmul.mubr.bf16.vlgmr.msra.gmra.mxu1 %v7230_v9  ;;  %1801 = vmatpush1.bf16.msra.mxu0 %v6133_v43  ;;  %v6223_v43 = vld [vmem:[#allocation7 + $0x310] ss:$48 sps:$4 sm:$0xff]  }
  0xd7   : > { %1842 = vmatpush1.bf16.msra.mxu1 %v6136_v44  ;;  %1802 = vmatprep.subr.bf16.mxu0 %v6141_v45  ;;  %v6226_v44 = vld [vmem:[#allocation7 + $0x18] ss:$48 sps:$4 sm:$0xff]   ;;  %v6231_v45 = vld [vmem:[#allocation7 + $0x5bc] ss:$48 sps:$4 sm:$0xff]  }
  0xd8   : > { %1843 = vmatprep.subr.bf16.mxu1 %v6144_v46  ;;  %1873 = vmatprep.mubr.bf16.mxu1 %v7020_v0  ;;  %v6234_v46 = vld [vmem:[#allocation7 + $0x8bc] ss:$48 sps:$4 sm:$0xff]  }
  0xd9   : > { %1832 = vmatprep.mubr.bf16.mxu0 %v7225_v53 }
  0xda   : > { %1803 = vmatpush1.bf16.msra.mxu0 %v6139_v47  ;;  %v6229_v47 = vld [vmem:[#allocation7 + $0x5b8] ss:$48 sps:$4 sm:$0xff]  }
  0xdb   : > { %1844 = vmatpush1.bf16.msra.mxu1 %v6142_v48  ;;  %1804 = vmatprep.subr.bf16.mxu0 %v6147_v49  ;;  %v6232_v48 = vld [vmem:[#allocation7 + $0x8b8] ss:$48 sps:$4 sm:$0xff]   ;;  %v6237_v49 = vld [vmem:[#allocation7 + $0x55c] ss:$48 sps:$4 sm:$0xff]  }
  0xdc   : > { %1845 = vmatprep.subr.bf16.mxu1 %v6150_v50  ;;  %v6240_v50 = vld [vmem:[#allocation7 + $0x85c] ss:$48 sps:$4 sm:$0xff]  }
  0xde   : > { %1805 = vmatpush1.bf16.msra.mxu0 %v6145_v51  ;;  %v6235_v51 = vld [vmem:[#allocation7 + $0x558] ss:$48 sps:$4 sm:$0xff]  }
  0xdf   : > { %1846 = vmatpush1.bf16.msra.mxu1 %v6148_v52  ;;  %1806 = vmatprep.subr.bf16.mxu0 %v6153_v54  ;;  %v6238_v52 = vld [vmem:[#allocation7 + $0x858] ss:$48 sps:$4 sm:$0xff]   ;;  %v6243_v54 = vld [vmem:[#allocation7 + $0x4fc] ss:$48 sps:$4 sm:$0xff]  }
  0xe0   : > { %1847 = vmatprep.subr.bf16.mxu1 %v6156_v55  ;;  %v6246_v55 = vld [vmem:[#allocation7 + $0x7fc] ss:$48 sps:$4 sm:$0xff]  }
  0xe2   : > { %1807 = vmatpush1.bf16.msra.mxu0 %v6151_v56  ;;  %v6241_v56 = vld [vmem:[#allocation7 + $0x4f8] ss:$48 sps:$4 sm:$0xff]  }
  0xe3   : > { %1848 = vmatpush1.bf16.msra.mxu1 %v6154_v57  ;;  %1808 = vmatprep.subr.bf16.mxu0 %v6159_v58  ;;  %v6244_v57 = vld [vmem:[#allocation7 + $0x7f8] ss:$48 sps:$4 sm:$0xff]   ;;  %v6249_v58 = vld [vmem:[#allocation7 + $0x49c] ss:$48 sps:$4 sm:$0xff]  }
  0xe4   : > { %1849 = vmatprep.subr.bf16.mxu1 %v6162_v59  ;;  %v6252_v59 = vld [vmem:[#allocation7 + $0x79c] ss:$48 sps:$4 sm:$0xff]  }
  0xe6   : > { %1809 = vmatpush1.bf16.msra.mxu0 %v6157_v60  ;;  %v6247_v60 = vld [vmem:[#allocation7 + $0x498] ss:$48 sps:$4 sm:$0xff]  }
  0xe7   : > { %1850 = vmatpush1.bf16.msra.mxu1 %v6160_v61  ;;  %1810 = vmatprep.subr.bf16.mxu0 %v6165_v62  ;;  %v6250_v61 = vld [vmem:[#allocation7 + $0x798] ss:$48 sps:$4 sm:$0xff]   ;;  %v6255_v62 = vld [vmem:[#allocation7 + $0x43c] ss:$48 sps:$4 sm:$0xff]  }
  0xe8   : > { %1851 = vmatprep.subr.bf16.mxu1 %v6168_v63  ;;  %v6258_v63 = vld [vmem:[#allocation7 + $0x73c] ss:$48 sps:$4 sm:$0xff]  }
  0xea   : > { %1811 = vmatpush1.bf16.msra.mxu0 %v6163_v1  ;;  %v6253_v1 = vld [vmem:[#allocation7 + $0x438] ss:$48 sps:$4 sm:$0xff]  }
  0xeb   : > { %1852 = vmatpush1.bf16.msra.mxu1 %v6166_v2  ;;  %1812 = vmatprep.subr.bf16.mxu0 %v6171_v3  ;;  %v6256_v2 = vld [vmem:[#allocation7 + $0x738] ss:$48 sps:$4 sm:$0xff]   ;;  %v6261_v3 = vld [vmem:[#allocation7 + $0x3dc] ss:$48 sps:$4 sm:$0xff]  }
  0xec   : > { %1853 = vmatprep.subr.bf16.mxu1 %v6174_v4  ;;  %v6264_v4 = vld [vmem:[#allocation7 + $0x6dc] ss:$48 sps:$4 sm:$0xff]  }
  0xee   : > { %1813 = vmatpush1.bf16.msra.mxu0 %v6169_v5  ;;  %v6259_v5 = vld [vmem:[#allocation7 + $0x3d8] ss:$48 sps:$4 sm:$0xff]  }
  0xef   : > { %1854 = vmatpush1.bf16.msra.mxu1 %v6172_v6  ;;  %1814 = vmatprep.subr.bf16.mxu0 %v6177_v7  ;;  %v6262_v6 = vld [vmem:[#allocation7 + $0x6d8] ss:$48 sps:$4 sm:$0xff]   ;;  %v6267_v7 = vld [vmem:[#allocation7 + $0x37c] ss:$48 sps:$4 sm:$0xff]  }
  0xf0   : > { %1855 = vmatprep.subr.bf16.mxu1 %v6180_v8  ;;  %v6270_v8 = vld [vmem:[#allocation7 + $0x67c] ss:$48 sps:$4 sm:$0xff]  }
  0xf2   : > { %1815 = vmatpush1.bf16.msra.mxu0 %v6175_v10  ;;  %v6265_v10 = vld [vmem:[#allocation7 + $0x378] ss:$48 sps:$4 sm:$0xff]  }
  0xf3   : > { %1856 = vmatpush1.bf16.msra.mxu1 %v6178_v11  ;;  %1816 = vmatprep.subr.bf16.mxu0 %v6183_v12  ;;  %v6268_v11 = vld [vmem:[#allocation7 + $0x678] ss:$48 sps:$4 sm:$0xff]   ;;  %v6273_v12 = vld [vmem:[#allocation7 + $0x31c] ss:$48 sps:$4 sm:$0xff]  }
  0xf4   : > { %1882 = vmatprep.subr.bf16.mxu1 %v6186_v13  ;;  %v6276_v13 = vld [vmem:[#allocation7 + $0x61c] ss:$48 sps:$4 sm:$0xff]  }
  0xf6   : > { %1874 = vmatmul.mubr.bf16.vlgmr.msra.gmra.mxu1 %v7221_v36  ;;  %1817 = vmatpush2.bf16.msra.mxu0 %v6181_v14  ;;  %v6271_v14 = vld [vmem:[#allocation7 + $0x318] ss:$48 sps:$4 sm:$0xff]  }
  0xf7   : > { %1883 = vmatpush1.bf16.msra.mxu1 %v6184_v15  ;;  %1818 = vmatprep.subr.bf16.mxu0 %v6189_v16  ;;  %v6274_v15 = vld [vmem:[#allocation7 + $0x618] ss:$48 sps:$4 sm:$0xff]  }
  0xf8   : > { %1884 = vmatprep.subr.bf16.mxu1 %v6192_v17  ;;  %1914 = vmatprep.mubr.bf16.mxu1 %v7225_v53  ;;  %v6279_v16 = vld [vmem:[#allocation10 + $0x3ac] ss:$12 sps:$4 sm:$0xff]   ;;  %v6277_v17 = vld [vmem:[#allocation10 + $0x3a8] ss:$12 sps:$4 sm:$0xff]  }
  0xfa   : > { %1819 = vmatpush2.bf16.msra.mxu0 %v6187_v18  ;;  %v6282_v18 = vld [vmem:[#allocation10 + $0x394] ss:$12 sps:$4 sm:$0xff]  }
  0xfb   : > { %1885 = vmatpush1.bf16.msra.mxu1 %v6190_v19  ;;  %1820 = vmatprep.subr.bf16.mxu0 %v6195_v20  ;;  %v6280_v19 = vld [vmem:[#allocation10 + $0x390] ss:$12 sps:$4 sm:$0xff]  }
  0xfc   : > { %1886 = vmatprep.subr.bf16.mxu1 %v6198_v21  ;;  %v6285_v20 = vld [vmem:[#allocation10 + $0x37c] ss:$12 sps:$4 sm:$0xff]   ;;  %v6283_v21 = vld [vmem:[#allocation10 + $0x378] ss:$12 sps:$4 sm:$0xff]  }
  0xfe   : > { %1821 = vmatpush2.bf16.msra.mxu0 %v6193_v22  ;;  %v6288_v22 = vld [vmem:[#allocation10 + $0x364] ss:$12 sps:$4 sm:$0xff]  }
  0xff   : > { %1887 = vmatpush1.bf16.msra.mxu1 %v6196_v23  ;;  %1822 = vmatprep.subr.bf16.mxu0 %v6201_v24  ;;  %v6304_v23 = vld [vmem:[#allocation10 + $0x528] ss:$12 sps:$4 sm:$0xff]   ;;  %v6306_v24 = vld [vmem:[#allocation10 + $0x52c] ss:$12 sps:$4 sm:$0xff]  }
 0x100   : > { %1888 = vmatprep.subr.bf16.mxu1 %v6204_v25  ;;  %v6312_v25 = vld [vmem:[#allocation10 + $0x514] ss:$12 sps:$4 sm:$0xff]  }
 0x102   : > { %1823 = vmatpush2.bf16.msra.mxu0 %v6199_v26  ;;  %v6286_v26 = vld [vmem:[#allocation10 + $0x360] ss:$12 sps:$4 sm:$0xff]  }
 0x103   : > { %1889 = vmatpush1.bf16.msra.mxu1 %v6202_v27  ;;  %1824 = vmatprep.subr.bf16.mxu0 %v6207_v28  ;;  %v6291_v27 = vld [vmem:[#allocation10 + $0x34c] ss:$12 sps:$4 sm:$0xff]   ;;  %v6310_v28 = vld [vmem:[#allocation10 + $0x510] ss:$12 sps:$4 sm:$0xff]  }
 0x104   : > { %1890 = vmatprep.subr.bf16.mxu1 %v6210_v29  ;;  %v6318_v29 = vld [vmem:[#allocation10 + $0x4fc] ss:$12 sps:$4 sm:$0xff]  }
 0x106   : > { %1825 = vmatpush2.bf16.msra.mxu0 %v6205_v30  ;;  %v6289_v30 = vld [vmem:[#allocation10 + $0x348] ss:$12 sps:$4 sm:$0xff]  }
 0x107   : > { %1891 = vmatpush1.bf16.msra.mxu1 %v6208_v31  ;;  %1826 = vmatprep.subr.bf16.mxu0 %v6213_v32  ;;  %v6294_v31 = vld [vmem:[#allocation10 + $0x334] ss:$12 sps:$4 sm:$0xff]   ;;  %v6316_v32 = vld [vmem:[#allocation10 + $0x4f8] ss:$12 sps:$4 sm:$0xff]  }
 0x108   : > { %1892 = vmatprep.subr.bf16.mxu1 %v6216_v33  ;;  %v6324_v33 = vld [vmem:[#allocation10 + $0x4e4] ss:$12 sps:$4 sm:$0xff]  }
 0x10a   : > { %1827 = vmatpush2.bf16.msra.mxu0 %v6211_v34  ;;  %v6292_v34 = vld [vmem:[#allocation10 + $0x330] ss:$12 sps:$4 sm:$0xff]  }
 0x10b   : > { %1893 = vmatpush1.bf16.msra.mxu1 %v6214_v35  ;;  %1828 = vmatprep.subr.bf16.mxu0 %v6219_v37  ;;  %v6297_v35 = vld [vmem:[#allocation10 + $0x31c] ss:$12 sps:$4 sm:$0xff]   ;;  %v6322_v37 = vld [vmem:[#allocation10 + $0x4e0] ss:$12 sps:$4 sm:$0xff]  }
 0x10c   : > { %1894 = vmatprep.subr.bf16.mxu1 %v6222_v38  ;;  %v6330_v38 = vld [vmem:[#allocation10 + $0x4cc] ss:$12 sps:$4 sm:$0xff]  }
 0x10e   : > { %1829 = vmatpush2.bf16.msra.mxu0 %v6217_v39  ;;  %v6295_v39 = vld [vmem:[#allocation10 + $0x318] ss:$12 sps:$4 sm:$0xff]  }
 0x10f   : > { %1895 = vmatpush1.bf16.msra.mxu1 %v6220_v40  ;;  %1830 = vmatprep.subr.bf16.mxu0 %v6225_v41  ;;  %v6300_v40 = vld [vmem:[#allocation10 + $0x304] ss:$12 sps:$4 sm:$0xff]   ;;  %v6328_v41 = vld [vmem:[#allocation10 + $0x4c8] ss:$12 sps:$4 sm:$0xff]  }
 0x110   : > { %1896 = vmatprep.subr.bf16.mxu1 %v6228_v42  ;;  %v6336_v42 = vld [vmem:[#allocation10 + $0x4b4] ss:$12 sps:$4 sm:$0xff]  }
 0x112   : > { %1831 = vmatpush2.bf16.msra.mxu0 %v6223_v43  ;;  %v6298_v43 = vld [vmem:[#allocation10 + $0x300] ss:$12 sps:$4 sm:$0xff]  }
 0x113   : > { %1897 = vmatpush1.bf16.msra.mxu1 %v6226_v44  ;;  %1923 = vmatprep.subr.bf16.mxu0 %v6234_v46  ;;  %v6303_v44 = vld [vmem:[#allocation10 + $0x46c] ss:$12 sps:$4 sm:$0xff]   ;;  %v6301_v46 = vld [vmem:[#allocation10 + $0x468] ss:$12 sps:$4 sm:$0xff]  }
 0x114   : > { %1898 = vmatprep.subr.bf16.mxu1 %v6231_v45  ;;  %v6334_v45 = vld [vmem:[#allocation10 + $0x4b0] ss:$12 sps:$4 sm:$0xff]  }
 0x115   : > { %1833 = vmatmul.mubr.bf16.vlgmr.msra.gmra.mxu0 %v7230_v9 }
 0x116   : > { %1924 = vmatpush1.bf16.msra.mxu0 %v6232_v48  ;;  %1955 = vmatprep.mubr.bf16.mxu0 %v7020_v0 }
 0x117   : > { %1899 = vmatpush2.bf16.msra.mxu1 %v6229_v47  ;;  %1925 = vmatprep.subr.bf16.mxu0 %v6240_v50  ;;  %v6309_v47 = vld [vmem:[#allocation10 + $0x454] ss:$12 sps:$4 sm:$0xff]   ;;  %v6342_v50 = vld [vmem:[#allocation10 + $0x49c] ss:$12 sps:$4 sm:$0xff]  }
 0x118   : > { %1900 = vmatprep.subr.bf16.mxu1 %v6237_v49  ;;  %v6307_v49 = vld [vmem:[#allocation10 + $0x450] ss:$12 sps:$4 sm:$0xff]  }
 0x11a   : > { %1926 = vmatpush1.bf16.msra.mxu0 %v6238_v52  ;;  %v6315_v52 = vld [vmem:[#allocation10 + $0x43c] ss:$12 sps:$4 sm:$0xff]  }
 0x11b   : > { %1901 = vmatpush2.bf16.msra.mxu1 %v6235_v51  ;;  %1927 = vmatprep.subr.bf16.mxu0 %v6246_v55 }
 0x11c   : > { %1902 = vmatprep.subr.bf16.mxu1 %v6243_v54  ;;  %v6340_v54 = vld [vmem:[#allocation10 + $0x498] ss:$12 sps:$4 sm:$0xff]  }
 0x11e   : > { %1928 = vmatpush1.bf16.msra.mxu0 %v6244_v57  ;;  %v6348_v57 = vld [vmem:[#allocation10 + $0x484] ss:$12 sps:$4 sm:$0xff]  }
 0x11f   : > { %1903 = vmatpush2.bf16.msra.mxu1 %v6241_v56  ;;  %1929 = vmatprep.subr.bf16.mxu0 %v6252_v59  ;;  %v6313_v56 = vld [vmem:[#allocation10 + $0x438] ss:$12 sps:$4 sm:$0xff]  }
 0x120   : > { %1904 = vmatprep.subr.bf16.mxu1 %v6249_v58  ;;  %v6321_v59 = vld [vmem:[#allocation10 + $0x424] ss:$12 sps:$4 sm:$0xff]  }
 0x122   : > { %1930 = vmatpush1.bf16.msra.mxu0 %v6250_v61  ;;  %v6319_v61 = vld [vmem:[#allocation10 + $0x420] ss:$12 sps:$4 sm:$0xff]  }
 0x123   : > { %1905 = vmatpush2.bf16.msra.mxu1 %v6247_v60  ;;  %1931 = vmatprep.subr.bf16.mxu0 %v6258_v63  ;;  %v6346_v60 = vld [vmem:[#allocation10 + $0x480] ss:$12 sps:$4 sm:$0xff]  }
 0x124   : > { %1906 = vmatprep.subr.bf16.mxu1 %v6255_v62  ;;  %v6351_v62 = vld [vmem:[#allocation10 + $0x5ec] ss:$12 sps:$4 sm:$0xff]  }
 0x125   : > { %v6327_v63 = vld [vmem:[#allocation10 + $0x40c] ss:$12 sps:$4 sm:$0xff]  }
 0x126   : > { %1932 = vmatpush1.bf16.msra.mxu0 %v6256_v2  ;;  %v6325_v2 = vld [vmem:[#allocation10 + $0x408] ss:$12 sps:$4 sm:$0xff]  }
 0x127   : > { %1907 = vmatpush2.bf16.msra.mxu1 %v6253_v1  ;;  %1933 = vmatprep.subr.bf16.mxu0 %v6264_v4  ;;  %v6349_v1 = vld [vmem:[#allocation10 + $0x5e8] ss:$12 sps:$4 sm:$0xff]  }
 0x128   : > { %1908 = vmatprep.subr.bf16.mxu1 %v6261_v3  ;;  %v6354_v3 = vld [vmem:[#allocation10 + $0x5d0] ss:$12 sps:$4 sm:$0xff]   ;;  %v6356_v4 = vld [vmem:[#allocation10 + $0x5d4] ss:$12 sps:$4 sm:$0xff]  }
 0x12a   : > { %1934 = vmatpush1.bf16.msra.mxu0 %v6262_v6  ;;  %v402_v6 = vlaneseq }
 0x12b   : > { %1909 = vmatpush2.bf16.msra.mxu1 %v6259_v5  ;;  %1935 = vmatprep.subr.bf16.mxu0 %v6270_v8  ;;  %v6333_v5 = vld [vmem:[#allocation10 + $0x3f4] ss:$12 sps:$4 sm:$0xff]   ;;  %v6359_v8 = vld [vmem:[#allocation10 + $0x5b8] ss:$12 sps:$4 sm:$0xff]  }
 0x12c   : > { %1910 = vmatprep.subr.bf16.mxu1 %v6267_v7  ;;  %v6331_v7 = vld [vmem:[#allocation10 + $0x3f0] ss:$12 sps:$4 sm:$0xff]  }
 0x12e   : > { %1936 = vmatpush1.bf16.msra.mxu0 %v6268_v11  ;;  %v6339_v11 = vld [vmem:[#allocation10 + $0x3dc] ss:$12 sps:$4 sm:$0xff]  }
 0x12f   : > { %1911 = vmatpush2.bf16.msra.mxu1 %v6265_v10  ;;  %1937 = vmatprep.subr.bf16.mxu0 %v6276_v13  ;;  %v6361_v10 = vld [vmem:[#allocation10 + $0x5bc] ss:$12 sps:$4 sm:$0xff]   ;;  %v6337_v13 = vld [vmem:[#allocation10 + $0x3d8] ss:$12 sps:$4 sm:$0xff]  }
 0x130   : > { %1912 = vmatprep.subr.bf16.mxu1 %v6273_v12  ;;  %v403_v12 = vshrl.u32 %v402_v6, 7 }
 0x132   : > { %1938 = vmatpush1.bf16.msra.mxu0 %v6274_v15  ;;  %v6366_v15 = vld [vmem:[#allocation10 + $0x5a4] ss:$12 sps:$4 sm:$0xff]  }
 0x133   : > { %1913 = vmatpush2.bf16.msra.mxu1 %v6271_v14  ;;  %2612 = vmatprep.subr.bf16.mxu0 %v6279_v16  ;;  %v6364_v14 = vld [vmem:[#allocation10 + $0x5a0] ss:$12 sps:$4 sm:$0xff]   ;;  %v6345_v16 = vld [vmem:[#allocation10 + $0x3c4] ss:$12 sps:$4 sm:$0xff]  }
 0x134   : > { %2653 = vmatprep.subr.bf16.mxu1 %v6306_v24 }
 0x135   : > { %1956 = vmatmul.mubr.bf16.vlgmr.msra.gmra.mxu0 %v7221_v36 }
 0x136   : > { %1915 = vmatmul.mubr.bf16.vlgmr.msra.gmra.mxu1 %v7230_v9  ;;  %2613 = vmatpush1.bf16.msra.mxu0 %v6277_v17  ;;  %v400_v17 = vld [vmem:[#allocation9] sm:$0xf] }
 0x137   : > { %2614 = vmatprep.subr.bf16.mxu0 %v6282_v18  ;;  %2654 = vmatpush1.bf16.msra.mxu1 %v6304_v23  ;;  %v7248_v18 = vsub.s32 0, %v403_v12  ;;  %v7250_v23 = vsub.s32 1, %v403_v12 }
 0x138   : > { %2655 = vmatprep.subr.bf16.mxu1 %v6312_v25  ;;  %v6374_v25 = vld [vmem:[#allocation10 + $0x570] ss:$12 sps:$4 sm:$0xff]  }
 0x139   : > { %v405_v24 = vrot.slane %v400_v17, %v7248_v18 }
 0x13a   : > { %2615 = vmatpush1.bf16.msra.mxu0 %v6280_v19  ;;  %v6343_v19 = vld [vmem:[#allocation10 + $0x3c0] ss:$12 sps:$4 sm:$0xff]  }
 0x13b   : > { %2616 = vmatprep.subr.bf16.mxu0 %v6285_v20  ;;  %2656 = vmatpush1.bf16.msra.mxu1 %v6310_v28  ;;  %v6369_v20 = vld [vmem:[#allocation10 + $0x588] ss:$12 sps:$4 sm:$0xff]  }
 0x13c   : > { %2657 = vmatprep.subr.bf16.mxu1 %v6318_v29 }
 0x13e   : > { %2617 = vmatpush1.bf16.msra.mxu0 %v6283_v21  ;;  %v6371_v21 = vld [vmem:[#allocation10 + $0x58c] ss:$12 sps:$4 sm:$0xff]  }
 0x13f   : > { %2618 = vmatprep.subr.bf16.mxu0 %v6288_v22  ;;  %2658 = vmatpush1.bf16.msra.mxu1 %v6316_v32  ;;  %v6352_v22 = vld [vmem:[#allocation10 + $0x470] ss:$12 sps:$4 sm:$0xff]  }
 0x140   : > { %2659 = vmatprep.subr.bf16.mxu1 %v6324_v33 }
 0x142   : > { %2619 = vmatpush1.bf16.msra.mxu0 %v6286_v26  ;;  %v6376_v26 = vld [vmem:[#allocation10 + $0x574] ss:$12 sps:$4 sm:$0xff]  }
 0x143   : > { %2620 = vmatprep.subr.bf16.mxu0 %v6291_v27  ;;  %2660 = vmatpush1.bf16.msra.mxu1 %v6322_v37  ;;  %v409_v27 = vrot.slane %v400_v17, %v7250_v23 }
 0x144   : > { %2661 = vmatprep.subr.bf16.mxu1 %v6330_v38 }
 0x146   : > { %2621 = vmatpush1.bf16.msra.mxu0 %v6289_v30 }
 0x147   : > { %2622 = vmatprep.subr.bf16.mxu0 %v6294_v31  ;;  %2662 = vmatpush1.bf16.msra.mxu1 %v6328_v41  ;;  %v6381_v31 = vld [vmem:[#allocation10 + $0x55c] ss:$12 sps:$4 sm:$0xff]  }
 0x148   : > { %2663 = vmatprep.subr.bf16.mxu1 %v6336_v42  ;;  %v6389_v41 = vld [vmem:[#allocation10 + $0x5f0] ss:$12 sps:$4 sm:$0xff]   ;;  %v7260_v42 = vsub.s32 2, %v403_v12 }
 0x14a   : > { %2623 = vmatpush1.bf16.msra.mxu0 %v6292_v34  ;;  %v6379_v34 = vld [vmem:[#allocation10 + $0x558] ss:$12 sps:$4 sm:$0xff]  }
 0x14b   : > { %2624 = vmatprep.subr.bf16.mxu0 %v6297_v35  ;;  %2664 = vmatpush1.bf16.msra.mxu1 %v6334_v45 }
 0x14c   : > { %2665 = vmatprep.subr.bf16.mxu1 %v6342_v50 }
 0x14e   : > { %2625 = vmatpush1.bf16.msra.mxu0 %v6295_v39  ;;  %v6386_v39 = vld [vmem:[#allocation10 + $0x544] ss:$12 sps:$4 sm:$0xff]  }
 0x14f   : > { %2626 = vmatprep.subr.bf16.mxu0 %v6300_v40  ;;  %2666 = vmatpush1.bf16.msra.mxu1 %v6340_v54  ;;  %v6384_v40 = vld [vmem:[#allocation10 + $0x540] ss:$12 sps:$4 sm:$0xff]  }
 0x150   : > { %2667 = vmatprep.subr.bf16.mxu1 %v6348_v57 }
 0x152   : > { %2627 = vmatpush1.bf16.msra.mxu0 %v6298_v43  ;;  %v7262_v43 = vsub.s32 3, %v403_v12 }
 0x153   : > { %2628 = vmatprep.subr.bf16.mxu0 %v6303_v44  ;;  %2668 = vmatpush1.bf16.msra.mxu1 %v6346_v60  ;;  %v413_v44 = vrot.slane %v400_v17, %v7260_v42 }
 0x154   : > { %2669 = vmatprep.subr.bf16.mxu1 %v6351_v62  ;;  %v417_v45 = vrot.slane %v400_v17, %v7262_v43  ;;  %v6357_v17 = vld [vmem:[#allocation10 + $0x458] ss:$12 sps:$4 sm:$0xff]  }
 0x156   : > { %v7244_v48 = vpop.f32.mrf.mxu1  ;;  %2629 = vmatpush2.bf16.msra.mxu0 %v6301_v46 }
 0x157   : > { %2630 = vmatprep.subr.bf16.mxu0 %v6309_v47  ;;  %2670 = vmatpush2.bf16.msra.mxu1 %v6349_v1 }
 0x158   : > { %v7246_v51 = vpop.f32.mrf.mxu1  ;;  %2671 = vmatprep.subr.bf16.mxu1 %v6356_v4 }
 0x15a   : > { %v981_v55 = vpop.f32.mrf.mxu1  ;;  %2631 = vmatpush2.bf16.msra.mxu0 %v6307_v49 }
 0x15b   : > { %2632 = vmatprep.subr.bf16.mxu0 %v6315_v52  ;;  %2672 = vmatpush2.bf16.msra.mxu1 %v6354_v3 }
 0x15c   : > { %v982_v58 = vpop.f32.mrf.mxu1  ;;  %2673 = vmatprep.subr.bf16.mxu1 %v6361_v10 }
 0x15e   : > { %2633 = vmatpush2.bf16.msra.mxu0 %v6313_v56 }
 0x15f   : > { %2634 = vmatprep.subr.bf16.mxu0 %v6321_v59  ;;  %2674 = vmatpush2.bf16.msra.mxu1 %v6359_v8 }
 0x160   : > { %2675 = vmatprep.subr.bf16.mxu1 %v6366_v15  ;;  %v6353_v15 = vld [vmem:[#allocation10 + $0x3b0] ss:$12 sps:$4 sm:$0xff]  }
 0x162   : > { %2635 = vmatpush2.bf16.msra.mxu0 %v6319_v61 }
 0x163   : > { %2636 = vmatprep.subr.bf16.mxu0 %v6327_v63  ;;  %2676 = vmatpush2.bf16.msra.mxu1 %v6364_v14  ;;  %v1298_v63 = vld [vmem:[#allocation9 + $0x4] sm:$0xf] }
 0x164   : > { %2677 = vmatprep.subr.bf16.mxu1 %v6371_v21  ;;  %v1303_v1 = vrot.slane %v1298_v63, %v7248_v18  ;;  %v6363_v21 = vld [vmem:[#allocation10 + $0x380] ss:$12 sps:$4 sm:$0xff]  }
 0x166   : > { %2637 = vmatpush2.bf16.msra.mxu0 %v6325_v2  ;;  %v1307_v2 = vrot.slane %v1298_v63, %v7250_v23 }
 0x167   : > { %2638 = vmatprep.subr.bf16.mxu0 %v6333_v5  ;;  %2678 = vmatpush2.bf16.msra.mxu1 %v6369_v20  ;;  %v6362_v20 = vld [vmem:[#allocation10 + $0x440] ss:$12 sps:$4 sm:$0xff]  }
 0x168   : > { %2679 = vmatprep.subr.bf16.mxu1 %v6376_v26  ;;  %v6373_v26 = vld [vmem:[#allocation10 + $0x350] ss:$12 sps:$4 sm:$0xff]  }
 0x16a   : > { %2639 = vmatpush2.bf16.msra.mxu0 %v6331_v7 }
 0x16b   : > { %2640 = vmatprep.subr.bf16.mxu0 %v6339_v11  ;;  %2680 = vmatpush2.bf16.msra.mxu1 %v6374_v25  ;;  %v6372_v25 = vld [vmem:[#allocation10 + $0x410] ss:$12 sps:$4 sm:$0xff]  }
 0x16c   : > { %2681 = vmatprep.subr.bf16.mxu1 %v6381_v31  ;;  %v1315_v31 = vrot.slane %v1298_v63, %v7262_v43 }
 0x16e   : > { %2641 = vmatpush2.bf16.msra.mxu0 %v6337_v13 }
 0x16f   : > { %2642 = vmatprep.subr.bf16.mxu0 %v6345_v16  ;;  %2682 = vmatpush2.bf16.msra.mxu1 %v6379_v34 }
 0x170   : > { %2683 = vmatprep.subr.bf16.mxu1 %v6386_v39 }
 0x172   : > { %2643 = vmatpush2.bf16.msra.mxu0 %v6343_v19  ;;  %v6358_v19 = vld [vmem:[#allocation10 + $0x398] ss:$12 sps:$4 sm:$0xff]  }
 0x173   : > { %5761 = vmatprep.subr.bf16.mxu0 %v6352_v22  ;;  %2684 = vmatpush2.bf16.msra.mxu1 %v6384_v40  ;;  %v6367_v22 = vld [vmem:[#allocation10 + $0x428] ss:$12 sps:$4 sm:$0xff]  }
 0x174   : > { %5783 = vmatprep.subr.bf16.mxu1 %v6389_v41  ;;  %v6387_v41 = vld [vmem:[#allocation10 + $0x3c8] ss:$12 sps:$4 sm:$0xff]  }
 0x175   : > { %v936_v28 = vpop.f32.mrf.mxu0 }
 0x176   : > { %v937_v29 = vadd.f32 %v936_v28, %v405_v24  ;;  %v6368_v24 = vld [vmem:[#allocation10 + $0x368] ss:$12 sps:$4 sm:$0xff]   ;;  %v1311_v28 = vrot.slane %v1298_v63, %v7260_v42  ;;  %v6394_v63 = vld [vmem:[#allocation10 + $0x5d8] ss:$12 sps:$4 sm:$0xff]  }
 0x177   : > { %v938_v30 = vpop.f32.mrf.mxu0 }
 0x178   : > { %v7255_v32 = vadd.f32 %v7244_v48, %v937_v29  ;;  %v939_v33 = vadd.f32 %v938_v30, %v409_v27  ;;  %v6377_v27 = vld [vmem:[#allocation10 + $0x3f8] ss:$12 sps:$4 sm:$0xff]   ;;  %v6382_v30 = vld [vmem:[#allocation10 + $0x3e0] ss:$12 sps:$4 sm:$0xff]  }
 0x179   : > { %v940_v35 = vpop.f32.mrf.mxu0  ;;  %v6378_v29 = vld [vmem:[#allocation10 + $0x338] ss:$12 sps:$4 sm:$0xff]  }
 0x17a   : > { %v7258_v37 = vadd.f32 %v7246_v51, %v939_v33 }
 0x17b   : > { %v941_v38 = vpop.f32.mrf.mxu0 }
 0x17c   : > { %v6383_v38 = vld [vmem:[#allocation10 + $0x320] ss:$12 sps:$4 sm:$0xff]  }
 0x195   : > { %v1059_v47 = vpop.f32.mrf.mxu0 }
 0x196   : > { %v1018_v46 = vpop.f32.mrf.mxu1 }
 0x197   : > { %v1019_v48 = vadd.f32 %v1018_v46, %v413_v44  ;;  %v1061_v50 = vpop.f32.mrf.mxu0 }
 0x198   : > { %v1020_v49 = vpop.f32.mrf.mxu1 }
 0x199   : > { %v7266_v51 = vadd.f32 %v1059_v47, %v1019_v48  ;;  %v1021_v52 = vadd.f32 %v1020_v49, %v417_v45  ;;  %v1063_v55 = vpop.f32.mrf.mxu0  ;;  %v6388_v49 = vld [vmem:[#allocation10 + $0x308] ss:$12 sps:$4 sm:$0xff]  }
 0x19a   : > { %v1022_v54 = vpop.f32.mrf.mxu1  ;;  %v6392_v55 = vld [vmem:[#allocation10 + $0xac] ss:$12 sps:$4 sm:$0xff]  }
 0x19b   : > { %v7268_v56 = vadd.f32 %v1061_v50, %v1021_v52  ;;  %v1064_v58 = vpop.f32.mrf.mxu0 }
 0x19c   : > { %v1023_v57 = vpop.f32.mrf.mxu1  ;;  %v1067_v58 = vmax.f32 %v7258_v37, 0.0  ;;  %v6399_v37 = vld [vmem:[#allocation10 + $0x5c0] ss:$12 sps:$4 sm:$0xff]  }
 0x1b6   : > { %v1875_v59 = vpop.f32.mrf.mxu1 }
 0x1b8   : > { %v1877_v60 = vpop.f32.mrf.mxu1 }
 0x1ba   : > { %v1879_v61 = vpop.f32.mrf.mxu1 }
 0x1bb   : > { %v6393_v61 = vld [vmem:[#allocation10 + $0x530] ss:$12 sps:$4 sm:$0xff]  }
 0x1bc   : > { %v1880_v62 = vpop.f32.mrf.mxu1 }
 0x1d5   : > { %v1834_v3 = vpop.f32.mrf.mxu0 }
 0x1d6   : > { %v1835_v4 = vadd.f32 %v1834_v3, %v1303_v1  ;;  %v6397_v1 = vld [vmem:[#allocation10 + $0x94] ss:$12 sps:$4 sm:$0xff]   ;;  %v6395_v3 = vld [vmem:[#allocation10 + $0x90] ss:$12 sps:$4 sm:$0xff]  }
 0x1d7   : > { %v1836_v5 = vpop.f32.mrf.mxu0 }
 0x1d8   : > { %v1876_v6 = vadd.f32 %v1875_v59, %v1835_v4  ;;  %v1837_v7 = vadd.f32 %v1836_v5, %v1307_v2  ;;  %v7277_v2 = vpack.c.bf16 %v1067_v58, %v1067_v58  ;;  %v6398_v4 = vld [vmem:[#allocation10 + $0x518] ss:$12 sps:$4 sm:$0xff]   ;;  %v6402_v5 = vld [vmem:[#allocation10 + $0x7c] ss:$12 sps:$4 sm:$0xff]  }
 0x1d9   : > { %v1838_v8 = vpop.f32.mrf.mxu0  ;;  %v6453_v58 = vld [vmem:[#allocation10 + $0x108] ss:$12 sps:$4 sm:$0xff]  }
 0x1da   : > { %v1878_v10 = vadd.f32 %v1877_v60, %v1837_v7  ;;  %v1964_v11 = vmax.f32 %v1876_v6, 0.0  ;;  %v6390_v60 = vld [vmem:[#allocation10 + $0xa8] ss:$12 sps:$4 sm:$0xff]   ;;  %v6400_v6 = vld [vmem:[#allocation10 + $0x78] ss:$12 sps:$4 sm:$0xff]  }
 0x1db   : > { %v1839_v12 = vpop.f32.mrf.mxu0  ;;  %v6403_v7 = vld [vmem:[#allocation10 + $0x500] ss:$12 sps:$4 sm:$0xff]   ;;  %v6404_v8 = vld [vmem:[#allocation10 + $0x5a8] ss:$12 sps:$4 sm:$0xff]  }
 0x1dc   : > { %v1965_v13 = vmax.f32 %v1878_v10, 0.0  ;;  %v1968_v16 = vpack.c.bf16 %v1964_v11, %v1964_v11  ;;  %v6407_v10 = vld [vmem:[#allocation10 + $0x64] ss:$12 sps:$4 sm:$0xff]   ;;  %v6405_v11 = vld [vmem:[#allocation10 + $0x60] ss:$12 sps:$4 sm:$0xff]  }
 0x1dd   : > { %v6408_v12 = vld [vmem:[#allocation10 + $0x4e8] ss:$12 sps:$4 sm:$0xff]  }
 0x1de   : > { %v1969_v14 = vpack.c.bf16 %v1965_v13, %v1965_v13  ;;  %v6409_v13 = vld [vmem:[#allocation10 + $0x590] ss:$12 sps:$4 sm:$0xff]  }
 0x1e0   : > { %2644 = vmatprep.mubr.bf16.mxu0 %v1969_v14 }
 0x1e1   : > { %2645 = vmatmul.mubr.bf16.vlgmr.msra.gmra.mxu0 %v1968_v16 }
 0x1e2   : > { %5762 = vmatpush3.bf16.msra.mxu0 %v6353_v15  ;;  %2726 = vmatprep.mubr.bf16.mxu0 %v1969_v14  ;;  %v6412_v14 = vld [vmem:[#allocation10 + $0x4c] ss:$12 sps:$4 sm:$0xff]   ;;  %v6410_v15 = vld [vmem:[#allocation10 + $0x48] ss:$12 sps:$4 sm:$0xff]  }
 0x1e3   : > { %5763 = vmatprep.subr.bf16.mxu0 %v6357_v17  ;;  %v6414_v17 = vld [vmem:[#allocation10 + $0x578] ss:$12 sps:$4 sm:$0xff]  }
 0x1e6   : > { %5764 = vmatpush3.bf16.msra.mxu0 %v6358_v19  ;;  %v6417_v19 = vld [vmem:[#allocation10 + $0x34] ss:$12 sps:$4 sm:$0xff]  }
 0x1e7   : > { %5765 = vmatprep.subr.bf16.mxu0 %v6362_v20  ;;  %v6415_v20 = vld [vmem:[#allocation10 + $0x30] ss:$12 sps:$4 sm:$0xff]  }
 0x1ea   : > { %5766 = vmatpush3.bf16.msra.mxu0 %v6363_v21  ;;  %v6418_v21 = vld [vmem:[#allocation10 + $0x4b8] ss:$12 sps:$4 sm:$0xff]  }
 0x1eb   : > { %5767 = vmatprep.subr.bf16.mxu0 %v6367_v22  ;;  %v6419_v22 = vld [vmem:[#allocation10 + $0x560] ss:$12 sps:$4 sm:$0xff]  }
 0x1ee   : > { %5768 = vmatpush3.bf16.msra.mxu0 %v6368_v24  ;;  %v6422_v24 = vld [vmem:[#allocation10 + $0x1c] ss:$12 sps:$4 sm:$0xff]  }
 0x1ef   : > { %5769 = vmatprep.subr.bf16.mxu0 %v6372_v25  ;;  %v6420_v25 = vld [vmem:[#allocation10 + $0x18] ss:$12 sps:$4 sm:$0xff]  }
 0x1f2   : > { %5770 = vmatpush3.bf16.msra.mxu0 %v6373_v26  ;;  %v6423_v26 = vld [vmem:[#allocation10 + $0x4a0] ss:$12 sps:$4 sm:$0xff]  }
 0x1f3   : > { %5771 = vmatprep.subr.bf16.mxu0 %v6377_v27  ;;  %v6424_v27 = vld [vmem:[#allocation10 + $0x548] ss:$12 sps:$4 sm:$0xff]  }
 0x1f5   : > { %v1957_v34 = vpop.f32.mrf.mxu0 }
 0x1f6   : > { %v1916_v33 = vpop.f32.mrf.mxu1  ;;  %5772 = vmatpush3.bf16.msra.mxu0 %v6378_v29  ;;  %v6425_v29 = vld [vmem:[#allocation10] ss:$12 sps:$4 sm:$0xff]  }
 0x1f7   : > { %v1917_v35 = vadd.f32 %v1916_v33, %v1311_v28  ;;  %v1959_v40 = vpop.f32.mrf.mxu0  ;;  %5773 = vmatprep.subr.bf16.mxu0 %v6382_v30  ;;  %v6427_v28 = vld [vmem:[#allocation10 + $0x4] ss:$12 sps:$4 sm:$0xff]   ;;  %v6428_v30 = vld [vmem:[#allocation10 + $0x488] ss:$12 sps:$4 sm:$0xff]   ;;  %v6434_v33 = vld [vmem:[#allocation10 + $0x22c] ss:$12 sps:$4 sm:$0xff]  }
 0x1f8   : > { %v1918_v39 = vpop.f32.mrf.mxu1 }
 0x1f9   : > { %v1958_v44 = vadd.f32 %v1957_v34, %v1917_v35  ;;  %v1919_v45 = vadd.f32 %v1918_v39, %v1315_v31  ;;  %v1961_v47 = vpop.f32.mrf.mxu0  ;;  %v6431_v31 = vld [vmem:[#allocation10 + $0x16c] ss:$12 sps:$4 sm:$0xff]   ;;  %v1069_v34 = vmax.f32 %v7268_v56, 0.0  ;;  %v6429_v35 = vld [vmem:[#allocation10 + $0x168] ss:$12 sps:$4 sm:$0xff]  }
 0x1fa   : > { %v1920_v46 = vpop.f32.mrf.mxu1  ;;  %5774 = vmatpush3.bf16.msra.mxu0 %v6383_v38  ;;  %v6432_v38 = vld [vmem:[#allocation10 + $0x228] ss:$12 sps:$4 sm:$0xff]   ;;  %v6441_v47 = vld [vmem:[#allocation10 + $0x138] ss:$12 sps:$4 sm:$0xff]  }
 0x1fb   : > { %v1960_v48 = vadd.f32 %v1959_v40, %v1919_v45  ;;  %v1966_v50 = vmax.f32 %v1958_v44, 0.0  ;;  %v1962_v54 = vpop.f32.mrf.mxu0  ;;  %5775 = vmatprep.subr.bf16.mxu0 %v6387_v41  ;;  %v6437_v39 = vld [vmem:[#allocation10 + $0x154] ss:$12 sps:$4 sm:$0xff]   ;;  %v7282_v41 = vpack.c.bf16 %v1069_v34, %v1069_v34  ;;  %v6435_v44 = vld [vmem:[#allocation10 + $0x150] ss:$12 sps:$4 sm:$0xff]  }
 0x1fc   : > { %v1921_v52 = vpop.f32.mrf.mxu1  ;;  %v6440_v40 = vld [vmem:[#allocation10 + $0x214] ss:$12 sps:$4 sm:$0xff]   ;;  %v6438_v45 = vld [vmem:[#allocation10 + $0x210] ss:$12 sps:$4 sm:$0xff]   ;;  %v6505_v34 = vld [vmem:[#allocation10 + $0xf8] ss:$12 sps:$4 sm:$0xff]  }
 0x1fd   : > { %v1967_v57 = vmax.f32 %v1960_v48, 0.0  ;;  %v7275_v62 = vpack.c.bf16 %v1966_v50, %v1966_v50  ;;  %v6443_v56 = vld [vmem:[#allocation10 + $0x13c] ss:$12 sps:$4 sm:$0xff]   ;;  %v6444_v48 = vld [vmem:[#allocation10 + $0x1f8] ss:$12 sps:$4 sm:$0xff]  }
 0x1fe   : > { %5776 = vmatpush3.bf16.msra.mxu0 %v6388_v49  ;;  %v6446_v46 = vld [vmem:[#allocation10 + $0x1fc] ss:$12 sps:$4 sm:$0xff]   ;;  %v6449_v49 = vld [vmem:[#allocation10 + $0x124] ss:$12 sps:$4 sm:$0xff]   ;;  %v6447_v52 = vld [vmem:[#allocation10 + $0x120] ss:$12 sps:$4 sm:$0xff]  }
 0x1ff   : > { %v1971_v59 = vpack.c.bf16 %v1967_v57, %v1967_v57  ;;  %3286 = vmatprep.subr.bf16.mxu0 %v6392_v55  ;;  %v6452_v50 = vld [vmem:[#allocation10 + $0x1e4] ss:$12 sps:$4 sm:$0xff]   ;;  %v6450_v54 = vld [vmem:[#allocation10 + $0x1e0] ss:$12 sps:$4 sm:$0xff]  }
 0x200   : > { %v6455_v55 = vld [vmem:[#allocation10 + $0x10c] ss:$12 sps:$4 sm:$0xff]  }
 0x201   : > { %2685 = vmatprep.mubr.bf16.mxu1 %v1971_v59  ;;  %2727 = vmatmul.mubr.bf16.vlgmr.msra.gmra.mxu0 %v1968_v16  ;;  %v6413_v16 = vld [vmem:[#allocation10 + $0x4d0] ss:$12 sps:$4 sm:$0xff]   ;;  %v6458_v57 = vld [vmem:[#allocation10 + $0x1cc] ss:$12 sps:$4 sm:$0xff]  }
 0x202   : > { %2686 = vmatmul.mubr.bf16.vlgmr.msra.gmra.mxu1 %v7275_v62  ;;  %3287 = vmatpush1.bf16.msra.mxu0 %v6390_v60  ;;  %v6461_v60 = vld [vmem:[#allocation10 + $0xf4] ss:$12 sps:$4 sm:$0xff]  }
 0x203   : > { %5784 = vmatpush3.bf16.msra.mxu1 %v6393_v61  ;;  %3318 = vmatprep.mubr.bf16.mxu0 %v7277_v2  ;;  %v6464_v61 = vld [vmem:[#allocation10 + $0x1b4] ss:$12 sps:$4 sm:$0xff]  }
 0x204   : > { %2766 = vmatprep.mubr.bf16.mxu1 %v1971_v59  ;;  %5785 = vmatprep.subr.bf16.mxu1 %v6394_v63  ;;  %v6456_v59 = vld [vmem:[#allocation10 + $0x1c8] ss:$12 sps:$4 sm:$0xff]   ;;  %v6462_v63 = vld [vmem:[#allocation10 + $0x1b0] ss:$12 sps:$4 sm:$0xff]  }
 0x205   : > { %3288 = vmatprep.subr.bf16.mxu0 %v6397_v1  ;;  %v6467_v1 = vld [vmem:[#allocation10 + $0xdc] ss:$12 sps:$4 sm:$0xff]  }
 0x206   : > { %3289 = vmatpush1.bf16.msra.mxu0 %v6395_v3  ;;  %v6470_v3 = vld [vmem:[#allocation10 + $0x19c] ss:$12 sps:$4 sm:$0xff]  }
 0x207   : > { %5786 = vmatpush3.bf16.msra.mxu1 %v6398_v4  ;;  %3290 = vmatprep.subr.bf16.mxu0 %v6402_v5  ;;  %v6465_v4 = vld [vmem:[#allocation10 + $0xd8] ss:$12 sps:$4 sm:$0xff]  }
 0x208   : > { %5787 = vmatprep.subr.bf16.mxu1 %v6399_v37  ;;  %v6468_v37 = vld [vmem:[#allocation10 + $0x198] ss:$12 sps:$4 sm:$0xff]  }
 0x209   : > { %v6473_v5 = vld [vmem:[#allocation10 + $0xc4] ss:$12 sps:$4 sm:$0xff]  }
 0x20a   : > { %3291 = vmatpush1.bf16.msra.mxu0 %v6400_v6  ;;  %v6476_v6 = vld [vmem:[#allocation10 + $0x184] ss:$12 sps:$4 sm:$0xff]  }
 0x20b   : > { %5788 = vmatpush3.bf16.msra.mxu1 %v6403_v7  ;;  %3292 = vmatprep.subr.bf16.mxu0 %v6407_v10  ;;  %v6471_v7 = vld [vmem:[#allocation10 + $0xc0] ss:$12 sps:$4 sm:$0xff]   ;;  %v1066_v10 = vmax.f32 %v7255_v32, 0.0  ;;  %v6486_v32 = vld [vmem:[#allocation10 + $0x98] ss:$12 sps:$4 sm:$0xff]  }
 0x20c   : > { %5789 = vmatprep.subr.bf16.mxu1 %v6404_v8  ;;  %v6474_v8 = vld [vmem:[#allocation10 + $0x180] ss:$12 sps:$4 sm:$0xff]  }
 0x20e   : > { %3293 = vmatpush1.bf16.msra.mxu0 %v6405_v11  ;;  %v6479_v11 = vld [vmem:[#allocation10 + $0x2ec] ss:$12 sps:$4 sm:$0xff]  }
 0x20f   : > { %5790 = vmatpush3.bf16.msra.mxu1 %v6408_v12  ;;  %3294 = vmatprep.subr.bf16.mxu0 %v6412_v14  ;;  %v6480_v12 = vld [vmem:[#allocation10 + $0x170] ss:$12 sps:$4 sm:$0xff]  }
 0x210   : > { %5791 = vmatprep.subr.bf16.mxu1 %v6409_v13  ;;  %v6477_v13 = vld [vmem:[#allocation10 + $0x2e8] ss:$12 sps:$4 sm:$0xff]   ;;  %v6481_v14 = vld [vmem:[#allocation10 + $0xb0] ss:$12 sps:$4 sm:$0xff]  }
 0x212   : > { %3295 = vmatpush1.bf16.msra.mxu0 %v6410_v15  ;;  %v7287_v15 = vpack.c.bf16 %v1066_v10, %v1066_v10  ;;  %v6542_v10 = vld [vmem:[#allocation10 + $0x278] ss:$12 sps:$4 sm:$0xff]  }
 0x213   : > { %5792 = vmatpush3.bf16.msra.mxu1 %v6413_v16  ;;  %3296 = vmatprep.subr.bf16.mxu0 %v6417_v19  ;;  %v6484_v16 = vld [vmem:[#allocation10 + $0x2d4] ss:$12 sps:$4 sm:$0xff]   ;;  %v6482_v19 = vld [vmem:[#allocation10 + $0x2d0] ss:$12 sps:$4 sm:$0xff]  }
 0x214   : > { %5793 = vmatprep.subr.bf16.mxu1 %v6414_v17  ;;  %v6485_v17 = vld [vmem:[#allocation10 + $0x158] ss:$12 sps:$4 sm:$0xff]  }
 0x216   : > { %3297 = vmatpush1.bf16.msra.mxu0 %v6415_v20  ;;  %v6489_v20 = vld [vmem:[#allocation10 + $0x2bc] ss:$12 sps:$4 sm:$0xff]  }
 0x217   : > { %5794 = vmatpush3.bf16.msra.mxu1 %v6418_v21  ;;  %3298 = vmatprep.subr.bf16.mxu0 %v6422_v24  ;;  %v6490_v21 = vld [vmem:[#allocation10 + $0x140] ss:$12 sps:$4 sm:$0xff]  }
 0x218   : > { %5795 = vmatprep.subr.bf16.mxu1 %v6419_v22  ;;  %v6487_v22 = vld [vmem:[#allocation10 + $0x2b8] ss:$12 sps:$4 sm:$0xff]   ;;  %v6491_v24 = vld [vmem:[#allocation10 + $0x80] ss:$12 sps:$4 sm:$0xff]  }
 0x21a   : > { %3299 = vmatpush1.bf16.msra.mxu0 %v6420_v25  ;;  %v6494_v25 = vld [vmem:[#allocation10 + $0x2a4] ss:$12 sps:$4 sm:$0xff]  }
 0x21b   : > { %5796 = vmatpush3.bf16.msra.mxu1 %v6423_v26  ;;  %3300 = vmatprep.subr.bf16.mxu0 %v6427_v28  ;;  %v6495_v26 = vld [vmem:[#allocation10 + $0x128] ss:$12 sps:$4 sm:$0xff]  }
 0x21c   : > { %5797 = vmatprep.subr.bf16.mxu1 %v6424_v27  ;;  %v6492_v27 = vld [vmem:[#allocation10 + $0x2a0] ss:$12 sps:$4 sm:$0xff]   ;;  %v6496_v28 = vld [vmem:[#allocation10 + $0x68] ss:$12 sps:$4 sm:$0xff]  }
 0x21e   : > { %3301 = vmatpush1.bf16.msra.mxu0 %v6425_v29  ;;  %v6499_v29 = vld [vmem:[#allocation10 + $0x28c] ss:$12 sps:$4 sm:$0xff]  }
 0x21f   : > { %5798 = vmatpush3.bf16.msra.mxu1 %v6428_v30  ;;  %3302 = vmatprep.subr.bf16.mxu0 %v6431_v31  ;;  %v6497_v30 = vld [vmem:[#allocation10 + $0x288] ss:$12 sps:$4 sm:$0xff]   ;;  %v6501_v31 = vld [vmem:[#allocation10 + $0x50] ss:$12 sps:$4 sm:$0xff]  }
 0x220   : > { %3327 = vmatprep.subr.bf16.mxu1 %v6434_v33  ;;  %v6504_v33 = vld [vmem:[#allocation10 + $0x274] ss:$12 sps:$4 sm:$0xff]  }
 0x222   : > { %2767 = vmatmul.mubr.bf16.vlgmr.msra.gmra.mxu1 %v7275_v62  ;;  %3303 = vmatpush2.bf16.msra.mxu0 %v6429_v35  ;;  %v6459_v62 = vld [vmem:[#allocation10 + $0xf0] ss:$12 sps:$4 sm:$0xff]  }
 0x223   : > { %3328 = vmatpush1.bf16.msra.mxu1 %v6432_v38  ;;  %3359 = vmatprep.mubr.bf16.mxu1 %v7282_v41  ;;  %v6502_v35 = vld [vmem:[#allocation10 + $0x270] ss:$12 sps:$4 sm:$0xff]   ;;  %v6506_v38 = vld [vmem:[#allocation10 + $0x38] ss:$12 sps:$4 sm:$0xff]  }
 0x224   : > { %3304 = vmatprep.subr.bf16.mxu0 %v6437_v39  ;;  %3329 = vmatprep.subr.bf16.mxu1 %v6440_v40  ;;  %v6509_v39 = vld [vmem:[#allocation10 + $0x25c] ss:$12 sps:$4 sm:$0xff]   ;;  %v6510_v40 = vld [vmem:[#allocation10 + $0xe0] ss:$12 sps:$4 sm:$0xff]  }
 0x226   : > { %3305 = vmatpush2.bf16.msra.mxu0 %v6435_v44  ;;  %v6507_v44 = vld [vmem:[#allocation10 + $0x258] ss:$12 sps:$4 sm:$0xff]  }
 0x227   : > { %3330 = vmatpush1.bf16.msra.mxu1 %v6438_v45  ;;  %3306 = vmatprep.subr.bf16.mxu0 %v6443_v56  ;;  %v6511_v45 = vld [vmem:[#allocation10 + $0x20] ss:$12 sps:$4 sm:$0xff]   ;;  %v6514_v56 = vld [vmem:[#allocation10 + $0x244] ss:$12 sps:$4 sm:$0xff]  }
 0x228   : > { %3331 = vmatprep.subr.bf16.mxu1 %v6446_v46  ;;  %v6515_v46 = vld [vmem:[#allocation10 + $0xc8] ss:$12 sps:$4 sm:$0xff]  }
 0x22a   : > { %3307 = vmatpush2.bf16.msra.mxu0 %v6441_v47  ;;  %v6512_v47 = vld [vmem:[#allocation10 + $0x240] ss:$12 sps:$4 sm:$0xff]  }
 0x22b   : > { %3332 = vmatpush1.bf16.msra.mxu1 %v6444_v48  ;;  %3308 = vmatprep.subr.bf16.mxu0 %v6449_v49  ;;  %v6516_v48 = vld [vmem:[#allocation10 + $0x8] ss:$12 sps:$4 sm:$0xff]   ;;  %v1068_v49 = vmax.f32 %v7266_v51, 0.0  ;;  %v6526_v51 = vld [vmem:[#allocation10 + $0x218] ss:$12 sps:$4 sm:$0xff]  }
 0x22c   : > { %3333 = vmatprep.subr.bf16.mxu1 %v6452_v50  ;;  %v6517_v50 = vld [vmem:[#allocation10 + $0x2f0] ss:$12 sps:$4 sm:$0xff]  }
 0x22e   : > { %3309 = vmatpush2.bf16.msra.mxu0 %v6447_v52  ;;  %v6520_v52 = vld [vmem:[#allocation7 + $0x2c4] ss:$48 sps:$4 sm:$0xff]  }
 0x22f   : > { %3334 = vmatpush1.bf16.msra.mxu1 %v6450_v54  ;;  %3310 = vmatprep.subr.bf16.mxu0 %v6455_v55  ;;  %v6521_v54 = vld [vmem:[#allocation10 + $0x230] ss:$12 sps:$4 sm:$0xff]   ;;  %v7292_v55 = vpack.c.bf16 %v1068_v49, %v1068_v49  ;;  %v6590_v49 = vld [vmem:[#allocation7 + $0x6e0] ss:$48 sps:$4 sm:$0xff]  }
 0x230   : > { %3335 = vmatprep.subr.bf16.mxu1 %v6458_v57  ;;  %v6518_v57 = vld [vmem:[#allocation7 + $0x2c0] ss:$48 sps:$4 sm:$0xff]  }
 0x232   : > { %3311 = vmatpush2.bf16.msra.mxu0 %v6453_v58  ;;  %v6522_v58 = vld [vmem:[#allocation10 + $0x2d8] ss:$12 sps:$4 sm:$0xff]  }
 0x233   : > { %3336 = vmatpush1.bf16.msra.mxu1 %v6456_v59  ;;  %3312 = vmatprep.subr.bf16.mxu0 %v6461_v60  ;;  %v6525_v59 = vld [vmem:[#allocation7 + $0x264] ss:$48 sps:$4 sm:$0xff]   ;;  %v6523_v60 = vld [vmem:[#allocation7 + $0x260] ss:$48 sps:$4 sm:$0xff]  }
 0x234   : > { %3337 = vmatprep.subr.bf16.mxu1 %v6464_v61  ;;  %v6527_v61 = vld [vmem:[#allocation10 + $0x2c0] ss:$12 sps:$4 sm:$0xff]  }
 0x236   : > { %3313 = vmatpush2.bf16.msra.mxu0 %v6459_v62  ;;  %v6530_v62 = vld [vmem:[#allocation7 + $0x204] ss:$48 sps:$4 sm:$0xff]  }
 0x237   : > { %3338 = vmatpush1.bf16.msra.mxu1 %v6462_v63  ;;  %3314 = vmatprep.subr.bf16.mxu0 %v6467_v1  ;;  %v6531_v63 = vld [vmem:[#allocation10 + $0x200] ss:$12 sps:$4 sm:$0xff]   ;;  %v6528_v1 = vld [vmem:[#allocation7 + $0x200] ss:$48 sps:$4 sm:$0xff]  }
 0x238   : > { %3339 = vmatprep.subr.bf16.mxu1 %v6470_v3  ;;  %v6532_v3 = vld [vmem:[#allocation10 + $0x2a8] ss:$12 sps:$4 sm:$0xff]  }
 0x23a   : > { %3315 = vmatpush2.bf16.msra.mxu0 %v6465_v4  ;;  %v6535_v4 = vld [vmem:[#allocation7 + $0x1a4] ss:$48 sps:$4 sm:$0xff]  }
 0x23b   : > { %3340 = vmatpush1.bf16.msra.mxu1 %v6468_v37  ;;  %3316 = vmatprep.subr.bf16.mxu0 %v6473_v5  ;;  %v6536_v37 = vld [vmem:[#allocation10 + $0x1e8] ss:$12 sps:$4 sm:$0xff]   ;;  %v6537_v5 = vld [vmem:[#allocation10 + $0x290] ss:$12 sps:$4 sm:$0xff]  }
 0x23c   : > { %3341 = vmatprep.subr.bf16.mxu1 %v6476_v6  ;;  %v6540_v6 = vld [vmem:[#allocation7 + $0x144] ss:$48 sps:$4 sm:$0xff]  }
 0x23e   : > { %3317 = vmatpush2.bf16.msra.mxu0 %v6471_v7  ;;  %v6541_v7 = vld [vmem:[#allocation10 + $0x1d0] ss:$12 sps:$4 sm:$0xff]  }
 0x23f   : > { %3342 = vmatpush1.bf16.msra.mxu1 %v6474_v8  ;;  %5805 = vmatprep.subr.bf16.mxu0 %v6480_v12  ;;  %v6538_v8 = vld [vmem:[#allocation7 + $0x140] ss:$48 sps:$4 sm:$0xff]  }
 0x240   : > { %3343 = vmatprep.subr.bf16.mxu1 %v6479_v11  ;;  %v6545_v11 = vld [vmem:[#allocation7 + $0xe4] ss:$48 sps:$4 sm:$0xff]  }
 0x241   : > { %3319 = vmatmul.mubr.bf16.vlgmr.msra.gmra.mxu0 %v7287_v15  ;;  %v6546_v12 = vld [vmem:[#allocation10 + $0x1b8] ss:$12 sps:$4 sm:$0xff]  }
 0x242   : > { %5806 = vmatpush3.bf16.msra.mxu0 %v6481_v14  ;;  %3400 = vmatprep.mubr.bf16.mxu0 %v7277_v2  ;;  %v6500_v2 = vld [vmem:[#allocation10 + $0x110] ss:$12 sps:$4 sm:$0xff]   ;;  %v6547_v14 = vld [vmem:[#allocation10 + $0x260] ss:$12 sps:$4 sm:$0xff]  }
 0x243   : > { %3344 = vmatpush2.bf16.msra.mxu1 %v6477_v13  ;;  %5807 = vmatprep.subr.bf16.mxu0 %v6485_v17  ;;  %v6543_v13 = vld [vmem:[#allocation7 + $0xe0] ss:$48 sps:$4 sm:$0xff]  }
 0x244   : > { %3345 = vmatprep.subr.bf16.mxu1 %v6484_v16  ;;  %v6551_v16 = vld [vmem:[#allocation10 + $0x1a0] ss:$12 sps:$4 sm:$0xff]   ;;  %v6548_v17 = vld [vmem:[#allocation7 + $0x80] ss:$48 sps:$4 sm:$0xff]  }
 0x246   : > { %5808 = vmatpush3.bf16.msra.mxu0 %v6486_v32  ;;  %v6555_v32 = vld [vmem:[#allocation7 + $0x24] ss:$48 sps:$4 sm:$0xff]  }
 0x247   : > { %3346 = vmatpush2.bf16.msra.mxu1 %v6482_v19  ;;  %5809 = vmatprep.subr.bf16.mxu0 %v6490_v21  ;;  %v6552_v19 = vld [vmem:[#allocation10 + $0x248] ss:$12 sps:$4 sm:$0xff]  }
 0x248   : > { %3347 = vmatprep.subr.bf16.mxu1 %v6489_v20  ;;  %v6556_v20 = vld [vmem:[#allocation10 + $0x188] ss:$12 sps:$4 sm:$0xff]  }
 0x249   : > { %v6553_v21 = vld [vmem:[#allocation7 + $0x20] ss:$48 sps:$4 sm:$0xff]  }
 0x24a   : > { %5810 = vmatpush3.bf16.msra.mxu0 %v6491_v24  ;;  %v6559_v24 = vld [vmem:[#allocation7 + $0x5c4] ss:$48 sps:$4 sm:$0xff]  }
 0x24b   : > { %3348 = vmatpush2.bf16.msra.mxu1 %v6487_v22  ;;  %5811 = vmatprep.subr.bf16.mxu0 %v6495_v26  ;;  %v6562_v22 = vld [vmem:[#allocation7 + $0x8c4] ss:$48 sps:$4 sm:$0xff]   ;;  %v6557_v26 = vld [vmem:[#allocation7 + $0x5c0] ss:$48 sps:$4 sm:$0xff]  }
 0x24c   : > { %3349 = vmatprep.subr.bf16.mxu1 %v6494_v25  ;;  %v6560_v25 = vld [vmem:[#allocation7 + $0x8c0] ss:$48 sps:$4 sm:$0xff]  }
 0x24e   : > { %5812 = vmatpush3.bf16.msra.mxu0 %v6496_v28  ;;  %v6565_v28 = vld [vmem:[#allocation7 + $0x564] ss:$48 sps:$4 sm:$0xff]  }
 0x24f   : > { %3350 = vmatpush2.bf16.msra.mxu1 %v6492_v27  ;;  %5813 = vmatprep.subr.bf16.mxu0 %v6500_v2  ;;  %v6568_v27 = vld [vmem:[#allocation7 + $0x864] ss:$48 sps:$4 sm:$0xff]   ;;  %v6563_v2 = vld [vmem:[#allocation7 + $0x560] ss:$48 sps:$4 sm:$0xff]  }
 0x250   : > { %3351 = vmatprep.subr.bf16.mxu1 %v6499_v29  ;;  %v6566_v29 = vld [vmem:[#allocation7 + $0x860] ss:$48 sps:$4 sm:$0xff]  }
 0x252   : > { %5814 = vmatpush3.bf16.msra.mxu0 %v6501_v31  ;;  %v6571_v31 = vld [vmem:[#allocation7 + $0x504] ss:$48 sps:$4 sm:$0xff]  }
 0x253   : > { %3352 = vmatpush2.bf16.msra.mxu1 %v6497_v30  ;;  %5815 = vmatprep.subr.bf16.mxu0 %v6505_v34  ;;  %v6574_v30 = vld [vmem:[#allocation7 + $0x804] ss:$48 sps:$4 sm:$0xff]   ;;  %v6569_v34 = vld [vmem:[#allocation7 + $0x500] ss:$48 sps:$4 sm:$0xff]  }
 0x254   : > { %3353 = vmatprep.subr.bf16.mxu1 %v6504_v33  ;;  %v6572_v33 = vld [vmem:[#allocation7 + $0x800] ss:$48 sps:$4 sm:$0xff]  }
 0x256   : > { %5816 = vmatpush3.bf16.msra.mxu0 %v6506_v38  ;;  %v6577_v38 = vld [vmem:[#allocation7 + $0x4a4] ss:$48 sps:$4 sm:$0xff]  }
 0x257   : > { %3354 = vmatpush2.bf16.msra.mxu1 %v6502_v35  ;;  %5817 = vmatprep.subr.bf16.mxu0 %v6510_v40  ;;  %v6580_v35 = vld [vmem:[#allocation7 + $0x7a4] ss:$48 sps:$4 sm:$0xff]   ;;  %v6575_v40 = vld [vmem:[#allocation7 + $0x4a0] ss:$48 sps:$4 sm:$0xff]  }
 0x258   : > { %3355 = vmatprep.subr.bf16.mxu1 %v6509_v39  ;;  %v6578_v39 = vld [vmem:[#allocation7 + $0x7a0] ss:$48 sps:$4 sm:$0xff]  }
 0x25a   : > { %5818 = vmatpush3.bf16.msra.mxu0 %v6511_v45  ;;  %v6583_v45 = vld [vmem:[#allocation7 + $0x444] ss:$48 sps:$4 sm:$0xff]  }
 0x25b   : > { %3356 = vmatpush2.bf16.msra.mxu1 %v6507_v44  ;;  %5819 = vmatprep.subr.bf16.mxu0 %v6515_v46  ;;  %v6586_v44 = vld [vmem:[#allocation7 + $0x744] ss:$48 sps:$4 sm:$0xff]   ;;  %v6581_v46 = vld [vmem:[#allocation7 + $0x440] ss:$48 sps:$4 sm:$0xff]  }
 0x25c   : > { %3357 = vmatprep.subr.bf16.mxu1 %v6514_v56  ;;  %v6584_v56 = vld [vmem:[#allocation7 + $0x740] ss:$48 sps:$4 sm:$0xff]  }
 0x25e   : > { %5820 = vmatpush3.bf16.msra.mxu0 %v6516_v48  ;;  %v6589_v48 = vld [vmem:[#allocation7 + $0x3e4] ss:$48 sps:$4 sm:$0xff]  }
 0x25f   : > { %3358 = vmatpush2.bf16.msra.mxu1 %v6512_v47  ;;  %4046 = vmatprep.subr.bf16.mxu0 %v6520_v52  ;;  %v6592_v47 = vld [vmem:[#allocation7 + $0x6e4] ss:$48 sps:$4 sm:$0xff]  }
 0x260   : > { %5827 = vmatprep.subr.bf16.mxu1 %v6517_v50  ;;  %v6587_v50 = vld [vmem:[#allocation7 + $0x3e0] ss:$48 sps:$4 sm:$0xff]   ;;  %v6598_v52 = vld [vmem:[#allocation7 + $0x684] ss:$48 sps:$4 sm:$0xff]  }
 0x261   : > { %3401 = vmatmul.mubr.bf16.vlgmr.msra.gmra.mxu0 %v7287_v15  ;;  %v6550_v15 = vld [vmem:[#allocation7 + $0x84] ss:$48 sps:$4 sm:$0xff]  }
 0x262   : > { %3360 = vmatmul.mubr.bf16.vlgmr.msra.gmra.mxu1 %v7292_v55  ;;  %4047 = vmatpush1.bf16.msra.mxu0 %v6518_v57  ;;  %v6593_v57 = vld [vmem:[#allocation7 + $0x380] ss:$48 sps:$4 sm:$0xff]  }
 0x263   : > { %5828 = vmatpush3.bf16.msra.mxu1 %v6521_v54  ;;  %3440 = vmatprep.mubr.bf16.mxu1 %v7282_v41  ;;  %v6533_v41 = vld [vmem:[#allocation7 + $0x1a0] ss:$48 sps:$4 sm:$0xff]   ;;  %v6595_v54 = vld [vmem:[#allocation7 + $0x384] ss:$48 sps:$4 sm:$0xff]  }
 0x264   : > { %5829 = vmatprep.subr.bf16.mxu1 %v6522_v58  ;;  %4048 = vmatprep.subr.bf16.mxu0 %v6525_v59  ;;  %v6604_v58 = vld [vmem:[#allocation7 + $0x624] ss:$48 sps:$4 sm:$0xff]  }
 0x265   : > { %4078 = vmatprep.mubr.bf16.mxu0 %v7225_v53  ;;  %v6601_v59 = vld [vmem:[#allocation7 + $0x324] ss:$48 sps:$4 sm:$0xff]  }
 0x266   : > { %4049 = vmatpush1.bf16.msra.mxu0 %v6523_v60  ;;  %v6599_v60 = vld [vmem:[#allocation7 + $0x320] ss:$48 sps:$4 sm:$0xff]  }
 0x267   : > { %5830 = vmatpush3.bf16.msra.mxu1 %v6526_v51  ;;  %4050 = vmatprep.subr.bf16.mxu0 %v6530_v62  ;;  %v6602_v51 = vld [vmem:[#allocation7 + $0x620] ss:$48 sps:$4 sm:$0xff]   ;;  %v6631_v62 = vld [vmem:[#allocation7 + $0x8cc] ss:$48 sps:$4 sm:$0xff]  }
 0x268   : > { %5831 = vmatprep.subr.bf16.mxu1 %v6527_v61  ;;  %v6607_v61 = vld [vmem:[#allocation7 + $0x2cc] ss:$48 sps:$4 sm:$0xff]  }
 0x26a   : > { %4051 = vmatpush1.bf16.msra.mxu0 %v6528_v1  ;;  %v6610_v1 = vld [vmem:[#allocation7 + $0x26c] ss:$48 sps:$4 sm:$0xff]  }
 0x26b   : > { %5832 = vmatpush3.bf16.msra.mxu1 %v6531_v63  ;;  %4052 = vmatprep.subr.bf16.mxu0 %v6535_v4  ;;  %v6605_v63 = vld [vmem:[#allocation7 + $0x2c8] ss:$48 sps:$4 sm:$0xff]   ;;  %v6637_v4 = vld [vmem:[#allocation7 + $0x86c] ss:$48 sps:$4 sm:$0xff]  }
 0x26c   : > { %5833 = vmatprep.subr.bf16.mxu1 %v6532_v3  ;;  %v6629_v3 = vld [vmem:[#allocation7 + $0x8c8] ss:$48 sps:$4 sm:$0xff]  }
 0x26e   : > { %4053 = vmatpush1.bf16.msra.mxu0 %v6533_v41  ;;  %v6608_v41 = vld [vmem:[#allocation7 + $0x268] ss:$48 sps:$4 sm:$0xff]  }
 0x26f   : > { %5834 = vmatpush3.bf16.msra.mxu1 %v6536_v37  ;;  %4054 = vmatprep.subr.bf16.mxu0 %v6540_v6  ;;  %v6613_v6 = vld [vmem:[#allocation7 + $0x20c] ss:$48 sps:$4 sm:$0xff]  }
 0x270   : > { %5835 = vmatprep.subr.bf16.mxu1 %v6537_v5 }
 0x272   : > { %4055 = vmatpush1.bf16.msra.mxu0 %v6538_v8  ;;  %v6643_v8 = vld [vmem:[#allocation7 + $0x80c] ss:$48 sps:$4 sm:$0xff]  }
 0x273   : > { %5836 = vmatpush3.bf16.msra.mxu1 %v6541_v7  ;;  %4056 = vmatprep.subr.bf16.mxu0 %v6545_v11  ;;  %v6635_v7 = vld [vmem:[#allocation7 + $0x868] ss:$48 sps:$4 sm:$0xff]  }
 0x274   : > { %5837 = vmatprep.subr.bf16.mxu1 %v6542_v10  ;;  %v6611_v11 = vld [vmem:[#allocation7 + $0x208] ss:$48 sps:$4 sm:$0xff]  }
 0x276   : > { %4057 = vmatpush1.bf16.msra.mxu0 %v6543_v13  ;;  %v6616_v13 = vld [vmem:[#allocation7 + $0x1ac] ss:$48 sps:$4 sm:$0xff]  }
 0x277   : > { %5838 = vmatpush3.bf16.msra.mxu1 %v6546_v12  ;;  %4058 = vmatprep.subr.bf16.mxu0 %v6550_v15  ;;  %v6649_v15 = vld [vmem:[#allocation7 + $0x7ac] ss:$48 sps:$4 sm:$0xff]  }
 0x278   : > { %5839 = vmatprep.subr.bf16.mxu1 %v6547_v14  ;;  %v6641_v14 = vld [vmem:[#allocation7 + $0x808] ss:$48 sps:$4 sm:$0xff]  }
 0x27a   : > { %4059 = vmatpush1.bf16.msra.mxu0 %v6548_v17  ;;  %v6619_v17 = vld [vmem:[#allocation7 + $0x14c] ss:$48 sps:$4 sm:$0xff]  }
 0x27b   : > { %5840 = vmatpush3.bf16.msra.mxu1 %v6551_v16  ;;  %4060 = vmatprep.subr.bf16.mxu0 %v6555_v32  ;;  %v6614_v16 = vld [vmem:[#allocation7 + $0x1a8] ss:$48 sps:$4 sm:$0xff]  }
 0x27c   : > { %5841 = vmatprep.subr.bf16.mxu1 %v6552_v19  ;;  %v6647_v19 = vld [vmem:[#allocation7 + $0x7a8] ss:$48 sps:$4 sm:$0xff]  }
 0x27d   : > { %v6617_v32 = vld [vmem:[#allocation7 + $0x148] ss:$48 sps:$4 sm:$0xff]  }
 0x27e   : > { %4061 = vmatpush1.bf16.msra.mxu0 %v6553_v21  ;;  %v6661_v21 = vld [vmem:[#allocation7 + $0x6ec] ss:$48 sps:$4 sm:$0xff]  }
 0x27f   : > { %5842 = vmatpush3.bf16.msra.mxu1 %v6556_v20  ;;  %4062 = vmatprep.subr.bf16.mxu0 %v6559_v24  ;;  %v6653_v20 = vld [vmem:[#allocation7 + $0x748] ss:$48 sps:$4 sm:$0xff]   ;;  %v6625_v24 = vld [vmem:[#allocation7 + $0x8c] ss:$48 sps:$4 sm:$0xff]  }
 0x280   : > { %4087 = vmatprep.subr.bf16.mxu1 %v6562_v22  ;;  %v6620_v22 = vld [vmem:[#allocation7 + $0xe8] ss:$48 sps:$4 sm:$0xff]  }
 0x282   : > { %3441 = vmatmul.mubr.bf16.vlgmr.msra.gmra.mxu1 %v7292_v55  ;;  %4063 = vmatpush2.bf16.msra.mxu0 %v6557_v26  ;;  %v6596_v55 = vld [vmem:[#allocation7 + $0x680] ss:$48 sps:$4 sm:$0xff]   ;;  %v6667_v26 = vld [vmem:[#allocation7 + $0x68c] ss:$48 sps:$4 sm:$0xff]  }
 0x283   : > { %4088 = vmatpush1.bf16.msra.mxu1 %v6560_v25  ;;  %4119 = vmatprep.mubr.bf16.mxu1 %v7020_v0  ;;  %v6659_v25 = vld [vmem:[#allocation7 + $0x6e8] ss:$48 sps:$4 sm:$0xff]  }
 0x284   : > { %4089 = vmatprep.subr.bf16.mxu1 %v6568_v27  ;;  %4064 = vmatprep.subr.bf16.mxu0 %v6565_v28  ;;  %v6623_v27 = vld [vmem:[#allocation7 + $0x88] ss:$48 sps:$4 sm:$0xff]   ;;  %v6628_v28 = vld [vmem:[#allocation7 + $0x2c] ss:$48 sps:$4 sm:$0xff]  }
 0x286   : > { %4065 = vmatpush2.bf16.msra.mxu0 %v6563_v2  ;;  %v6673_v2 = vld [vmem:[#allocation7 + $0x62c] ss:$48 sps:$4 sm:$0xff]  }
 0x287   : > { %4090 = vmatpush1.bf16.msra.mxu1 %v6566_v29  ;;  %4066 = vmatprep.subr.bf16.mxu0 %v6571_v31  ;;  %v6665_v29 = vld [vmem:[#allocation7 + $0x688] ss:$48 sps:$4 sm:$0xff]   ;;  %v6634_v31 = vld [vmem:[#allocation7 + $0x5cc] ss:$48 sps:$4 sm:$0xff]  }
 0x288   : > { %4091 = vmatprep.subr.bf16.mxu1 %v6574_v30  ;;  %v6626_v30 = vld [vmem:[#allocation7 + $0x28] ss:$48 sps:$4 sm:$0xff]  }
 0x28a   : > { %4067 = vmatpush2.bf16.msra.mxu0 %v6569_v34  ;;  %v6679_v34 = vld [vmem:[#allocation10 + $0x6ac] ss:$12 sps:$4 sm:$0xff]  }
 0x28b   : > { %4092 = vmatpush1.bf16.msra.mxu1 %v6572_v33  ;;  %4068 = vmatprep.subr.bf16.mxu0 %v6577_v38  ;;  %v6671_v33 = vld [vmem:[#allocation7 + $0x628] ss:$48 sps:$4 sm:$0xff]   ;;  %v6640_v38 = vld [vmem:[#allocation7 + $0x56c] ss:$48 sps:$4 sm:$0xff]  }
 0x28c   : > { %4093 = vmatprep.subr.bf16.mxu1 %v6580_v35  ;;  %v6632_v35 = vld [vmem:[#allocation7 + $0x5c8] ss:$48 sps:$4 sm:$0xff]  }
 0x28e   : > { %4069 = vmatpush2.bf16.msra.mxu0 %v6575_v40  ;;  %v6682_v40 = vld [vmem:[#allocation10 + $0x694] ss:$12 sps:$4 sm:$0xff]  }
 0x28f   : > { %4094 = vmatpush1.bf16.msra.mxu1 %v6578_v39  ;;  %4070 = vmatprep.subr.bf16.mxu0 %v6583_v45  ;;  %v6677_v39 = vld [vmem:[#allocation10 + $0x6a8] ss:$12 sps:$4 sm:$0xff]  }
 0x290   : > { %4095 = vmatprep.subr.bf16.mxu1 %v6586_v44 }
 0x292   : > { %4071 = vmatpush2.bf16.msra.mxu0 %v6581_v46  ;;  %v6638_v46 = vld [vmem:[#allocation7 + $0x568] ss:$48 sps:$4 sm:$0xff]  }
 0x293   : > { %4096 = vmatpush1.bf16.msra.mxu1 %v6584_v56  ;;  %4072 = vmatprep.subr.bf16.mxu0 %v6589_v48 }
 0x294   : > { %4097 = vmatprep.subr.bf16.mxu1 %v6592_v47 }
 0x296   : > { %4073 = vmatpush2.bf16.msra.mxu0 %v6587_v50  ;;  %v6680_v50 = vld [vmem:[#allocation10 + $0x690] ss:$12 sps:$4 sm:$0xff]  }
 0x297   : > { %4098 = vmatpush1.bf16.msra.mxu1 %v6590_v49  ;;  %4074 = vmatprep.subr.bf16.mxu0 %v6595_v54  ;;  %v6646_v49 = vld [vmem:[#allocation7 + $0x50c] ss:$48 sps:$4 sm:$0xff]  }
 0x298   : > { %4099 = vmatprep.subr.bf16.mxu1 %v6598_v52 }
 0x29a   : > { %4075 = vmatpush2.bf16.msra.mxu0 %v6593_v57 }
 0x29b   : > { %4100 = vmatpush1.bf16.msra.mxu1 %v6596_v55  ;;  %4076 = vmatprep.subr.bf16.mxu0 %v6601_v59  ;;  %v6685_v55 = vld [vmem:[#allocation10 + $0x67c] ss:$12 sps:$4 sm:$0xff]  }
 0x29c   : > { %4101 = vmatprep.subr.bf16.mxu1 %v6604_v58  ;;  %v6644_v59 = vld [vmem:[#allocation7 + $0x508] ss:$48 sps:$4 sm:$0xff]  }
 0x29e   : > { %4077 = vmatpush2.bf16.msra.mxu0 %v6599_v60 }
 0x29f   : > { %4102 = vmatpush1.bf16.msra.mxu1 %v6602_v51  ;;  %4169 = vmatprep.subr.bf16.mxu0 %v6631_v62  ;;  %v6688_v62 = vld [vmem:[#allocation10 + $0x664] ss:$12 sps:$4 sm:$0xff]  }
 0x2a0   : > { %4128 = vmatprep.subr.bf16.mxu1 %v6607_v61  ;;  %v6683_v61 = vld [vmem:[#allocation10 + $0x678] ss:$12 sps:$4 sm:$0xff]  }
 0x2a1   : > { %v7301_v37 = vpop.f32.mrf.mxu0  ;;  %4079 = vmatmul.mubr.bf16.vlgmr.msra.gmra.mxu0 %v7230_v9 }
 0x2a2   : > { %4120 = vmatmul.mubr.bf16.vlgmr.msra.gmra.mxu1 %v7221_v36  ;;  %4170 = vmatpush1.bf16.msra.mxu0 %v6629_v3  ;;  %v6686_v3 = vld [vmem:[#allocation10 + $0x660] ss:$12 sps:$4 sm:$0xff]  }
 0x2a3   : > { %4129 = vmatpush1.bf16.msra.mxu1 %v6605_v63  ;;  %v7304_v5 = vpop.f32.mrf.mxu0  ;;  %4171 = vmatprep.subr.bf16.mxu0 %v6637_v4  ;;  %v6650_v63 = vld [vmem:[#allocation7 + $0x4a8] ss:$48 sps:$4 sm:$0xff]  }
 0x2a4   : > { %4130 = vmatprep.subr.bf16.mxu1 %v6610_v1  ;;  %4201 = vmatprep.mubr.bf16.mxu0 %v7020_v0  ;;  %v6655_v0 = vld [vmem:[#allocation7 + $0x74c] ss:$48 sps:$4 sm:$0xff]   ;;  %v6691_v4 = vld [vmem:[#allocation10 + $0x64c] ss:$12 sps:$4 sm:$0xff]  }
 0x2a5   : > { %v2650_v10 = vpop.f32.mrf.mxu0  ;;  %4160 = vmatprep.mubr.bf16.mxu1 %v7225_v53  ;;  %v6622_v53 = vld [vmem:[#allocation7 + $0xec] ss:$48 sps:$4 sm:$0xff]  }
 0x2a6   : > { %4172 = vmatpush1.bf16.msra.mxu0 %v6635_v7  ;;  %v6658_v1 = vld [vmem:[#allocation7 + $0x44c] ss:$48 sps:$4 sm:$0xff]   ;;  %v6662_v7 = vld [vmem:[#allocation7 + $0x3e8] ss:$48 sps:$4 sm:$0xff]  }
 0x2a7   : > { %4131 = vmatpush1.bf16.msra.mxu1 %v6608_v41  ;;  %v2651_v12 = vpop.f32.mrf.mxu0  ;;  %4173 = vmatprep.subr.bf16.mxu0 %v6643_v8  ;;  %v6664_v41 = vld [vmem:[#allocation7 + $0x3ec] ss:$48 sps:$4 sm:$0xff]  }
 0x2a8   : > { %4132 = vmatprep.subr.bf16.mxu1 %v6613_v6  ;;  %v6694_v6 = vld [vmem:[#allocation10 + $0x634] ss:$12 sps:$4 sm:$0xff]   ;;  %v6692_v10 = vld [vmem:[#allocation10 + $0x630] ss:$12 sps:$4 sm:$0xff]  }
 0x2a9   : > { %v6670_v8 = vld [vmem:[#allocation7 + $0x38c] ss:$48 sps:$4 sm:$0xff]   ;;  %v6668_v12 = vld [vmem:[#allocation7 + $0x388] ss:$48 sps:$4 sm:$0xff]  }
 0x2aa   : > { %4174 = vmatpush1.bf16.msra.mxu0 %v6641_v14  ;;  %v6695_v14 = vld [vmem:[#allocation10 + $0x618] ss:$12 sps:$4 sm:$0xff]  }
 0x2ab   : > { %4133 = vmatpush1.bf16.msra.mxu1 %v6611_v11  ;;  %4175 = vmatprep.subr.bf16.mxu0 %v6649_v15  ;;  %v6697_v11 = vld [vmem:[#allocation10 + $0x61c] ss:$12 sps:$4 sm:$0xff]   ;;  %v6700_v15 = vld [vmem:[#allocation10 + $0x604] ss:$12 sps:$4 sm:$0xff]  }
 0x2ac   : > { %4134 = vmatprep.subr.bf16.mxu1 %v6616_v13  ;;  %v6676_v13 = vld [vmem:[#allocation7 + $0x32c] ss:$48 sps:$4 sm:$0xff]  }
 0x2ae   : > { %4176 = vmatpush1.bf16.msra.mxu0 %v6647_v19  ;;  %v6703_v19 = vld [vmem:[#allocation10 + $0x76c] ss:$12 sps:$4 sm:$0xff]  }
 0x2af   : > { %4135 = vmatpush1.bf16.msra.mxu1 %v6614_v16  ;;  %4177 = vmatprep.subr.bf16.mxu0 %v6655_v0  ;;  %v6674_v16 = vld [vmem:[#allocation7 + $0x328] ss:$48 sps:$4 sm:$0xff]   ;;  %v6701_v0 = vld [vmem:[#allocation10 + $0x768] ss:$12 sps:$4 sm:$0xff]  }
 0x2b0   : > { %4136 = vmatprep.subr.bf16.mxu1 %v6619_v17  ;;  %v6698_v17 = vld [vmem:[#allocation10 + $0x600] ss:$12 sps:$4 sm:$0xff]  }
 0x2b2   : > { %4178 = vmatpush1.bf16.msra.mxu0 %v6653_v20 }
 0x2b3   : > { %4137 = vmatpush1.bf16.msra.mxu1 %v6617_v32  ;;  %4179 = vmatprep.subr.bf16.mxu0 %v6661_v21  ;;  %v6706_v32 = vld [vmem:[#allocation10 + $0x754] ss:$12 sps:$4 sm:$0xff]   ;;  %v6704_v21 = vld [vmem:[#allocation10 + $0x750] ss:$12 sps:$4 sm:$0xff]  }
 0x2b4   : > { %4138 = vmatprep.subr.bf16.mxu1 %v6622_v53 }
 0x2b6   : > { %4180 = vmatpush1.bf16.msra.mxu0 %v6659_v25 }
 0x2b7   : > { %4139 = vmatpush1.bf16.msra.mxu1 %v6620_v22  ;;  %4181 = vmatprep.subr.bf16.mxu0 %v6667_v26 }
 0x2b8   : > { %4140 = vmatprep.subr.bf16.mxu1 %v6625_v24  ;;  %v6709_v24 = vld [vmem:[#allocation10 + $0x73c] ss:$12 sps:$4 sm:$0xff]  }
 0x2ba   : > { %4182 = vmatpush1.bf16.msra.mxu0 %v6665_v29  ;;  %v6712_v29 = vld [vmem:[#allocation10 + $0x724] ss:$12 sps:$4 sm:$0xff]  }
 0x2bb   : > { %4141 = vmatpush1.bf16.msra.mxu1 %v6623_v27  ;;  %4183 = vmatprep.subr.bf16.mxu0 %v6673_v2  ;;  %v6710_v2 = vld [vmem:[#allocation10 + $0x720] ss:$12 sps:$4 sm:$0xff]  }
 0x2bc   : > { %4142 = vmatprep.subr.bf16.mxu1 %v6628_v28  ;;  %v6707_v28 = vld [vmem:[#allocation10 + $0x738] ss:$12 sps:$4 sm:$0xff]  }
 0x2be   : > { %4184 = vmatpush1.bf16.msra.mxu0 %v6671_v33  ;;  %v6713_v33 = vld [vmem:[#allocation10 + $0x708] ss:$12 sps:$4 sm:$0xff]  }
 0x2bf   : > { %4143 = vmatpush1.bf16.msra.mxu1 %v6626_v30  ;;  %4858 = vmatprep.subr.bf16.mxu0 %v6679_v34  ;;  %v6727_v30 = vld [vmem:[#allocation10 + $0x82c] ss:$12 sps:$4 sm:$0xff]   ;;  %v6730_v34 = vld [vmem:[#allocation10 + $0x810] ss:$12 sps:$4 sm:$0xff]  }
 0x2c0   : > { %4144 = vmatprep.subr.bf16.mxu1 %v6634_v31  ;;  %v6725_v31 = vld [vmem:[#allocation10 + $0x828] ss:$12 sps:$4 sm:$0xff]  }
 0x2c1   : > { %v5777_v44 = vpop.f32.mrf.mxu0  ;;  %4202 = vmatmul.mubr.bf16.vlgmr.msra.gmra.mxu0 %v7221_v36  ;;  %v6652_v36 = vld [vmem:[#allocation7 + $0x4ac] ss:$48 sps:$4 sm:$0xff]  }
 0x2c2   : > { %v2687_v45 = vpop.f32.mrf.mxu1  ;;  %4859 = vmatpush1.bf16.msra.mxu0 %v6677_v39  ;;  %v6716_v39 = vld [vmem:[#allocation10 + $0x6f0] ss:$12 sps:$4 sm:$0xff]  }
 0x2c3   : > { %v7309_v56 = vadd.f32 %v2687_v45, %v7301_v37  ;;  %4145 = vmatpush2.bf16.msra.mxu1 %v6632_v35  ;;  %v5778_v47 = vpop.f32.mrf.mxu0  ;;  %4860 = vmatprep.subr.bf16.mxu0 %v6682_v40  ;;  %v6656_v37 = vld [vmem:[#allocation7 + $0x448] ss:$48 sps:$4 sm:$0xff]   ;;  %v6732_v35 = vld [vmem:[#allocation10 + $0x814] ss:$12 sps:$4 sm:$0xff]   ;;  %v6735_v40 = vld [vmem:[#allocation10 + $0x7f8] ss:$12 sps:$4 sm:$0xff]  }
 0x2c4   : > { %v2689_v48 = vpop.f32.mrf.mxu1  ;;  %4146 = vmatprep.subr.bf16.mxu1 %v6640_v38  ;;  %v7312_v52 = vadd.f32 %v5778_v47, %v5777_v44  ;;  %v6718_v38 = vld [vmem:[#allocation10 + $0x6f4] ss:$12 sps:$4 sm:$0xff]   ;;  %v6737_v44 = vld [vmem:[#allocation10 + $0x7fc] ss:$12 sps:$4 sm:$0xff]  }
 0x2c5   : > { %v7315_v54 = vadd.f32 %v2689_v48, %v7304_v5  ;;  %v5780_v57 = vpop.f32.mrf.mxu0  ;;  %v6689_v5 = vld [vmem:[#allocation10 + $0x648] ss:$12 sps:$4 sm:$0xff]   ;;  %v6740_v47 = vld [vmem:[#allocation10 + $0x7e0] ss:$12 sps:$4 sm:$0xff]   ;;  %v6742_v48 = vld [vmem:[#allocation10 + $0x7e4] ss:$12 sps:$4 sm:$0xff]  }
 0x2c6   : > { %v2691_v58 = vpop.f32.mrf.mxu1  ;;  %4861 = vmatpush1.bf16.msra.mxu0 %v6680_v50  ;;  %v6721_v45 = vld [vmem:[#allocation10 + $0x6dc] ss:$12 sps:$4 sm:$0xff]   ;;  %v6722_v50 = vld [vmem:[#allocation10 + $0x6c0] ss:$12 sps:$4 sm:$0xff]  }
 0x2c7   : > { %4147 = vmatpush2.bf16.msra.mxu1 %v6638_v46  ;;  %v5781_v51 = vpop.f32.mrf.mxu0  ;;  %4862 = vmatprep.subr.bf16.mxu0 %v6685_v55  ;;  %v6719_v46 = vld [vmem:[#allocation10 + $0x6d8] ss:$12 sps:$4 sm:$0xff]   ;;  %v6728_v57 = vld [vmem:[#allocation10 + $0x770] ss:$12 sps:$4 sm:$0xff]  }
 0x2c8   : > { %v2692_v60 = vpop.f32.mrf.mxu1  ;;  %4148 = vmatprep.subr.bf16.mxu1 %v6646_v49  ;;  %v6724_v49 = vld [vmem:[#allocation10 + $0x6c4] ss:$12 sps:$4 sm:$0xff]   ;;  %v6747_v55 = vld [vmem:[#allocation10 + $0x7cc] ss:$12 sps:$4 sm:$0xff]  }
 0x2c9   : > { %v6750_v58 = vld [vmem:[#allocation10 + $0x7b0] ss:$12 sps:$4 sm:$0xff]  }
 0x2ca   : > { %4863 = vmatpush1.bf16.msra.mxu0 %v6683_v61  ;;  %v6755_v61 = vld [vmem:[#allocation10 + $0x798] ss:$12 sps:$4 sm:$0xff]  }
 0x2cb   : > { %4149 = vmatpush2.bf16.msra.mxu1 %v6644_v59  ;;  %4864 = vmatprep.subr.bf16.mxu0 %v6688_v62  ;;  %v6752_v59 = vld [vmem:[#allocation10 + $0x7b4] ss:$12 sps:$4 sm:$0xff]   ;;  %v6757_v62 = vld [vmem:[#allocation10 + $0x79c] ss:$12 sps:$4 sm:$0xff]  }
 0x2cc   : > { %4150 = vmatprep.subr.bf16.mxu1 %v6652_v36 }
 0x2ce   : > { %4865 = vmatpush1.bf16.msra.mxu0 %v6686_v3 }
 0x2cf   : > { %4151 = vmatpush2.bf16.msra.mxu1 %v6650_v63  ;;  %4866 = vmatprep.subr.bf16.mxu0 %v6691_v4  ;;  %v6760_v4 = vld [vmem:[#allocation10 + $0x780] ss:$12 sps:$4 sm:$0xff]  }
 0x2d0   : > { %4152 = vmatprep.subr.bf16.mxu1 %v6658_v1 }
 0x2d2   : > { %4867 = vmatpush1.bf16.msra.mxu0 %v6689_v5  ;;  %v6767_v5 = vld [vmem:[#allocation10 + $0x8ec] ss:$12 sps:$4 sm:$0xff]  }
 0x2d3   : > { %4153 = vmatpush2.bf16.msra.mxu1 %v6656_v37  ;;  %4868 = vmatprep.subr.bf16.mxu0 %v6694_v6  ;;  %v6762_v37 = vld [vmem:[#allocation10 + $0x784] ss:$12 sps:$4 sm:$0xff]  }
 0x2d4   : > { %4154 = vmatprep.subr.bf16.mxu1 %v6664_v41  ;;  %v6765_v41 = vld [vmem:[#allocation10 + $0x8e8] ss:$12 sps:$4 sm:$0xff]   ;;  %v6768_v6 = vld [vmem:[#allocation10 + $0x8d0] ss:$12 sps:$4 sm:$0xff]  }
 0x2d6   : > { %4869 = vmatpush1.bf16.msra.mxu0 %v6692_v10  ;;  %v6774_v10 = vld [vmem:[#allocation10 + $0x8a0] ss:$12 sps:$4 sm:$0xff]  }
 0x2d7   : > { %4155 = vmatpush2.bf16.msra.mxu1 %v6662_v7  ;;  %4870 = vmatprep.subr.bf16.mxu0 %v6697_v11  ;;  %v6773_v7 = vld [vmem:[#allocation10 + $0x8bc] ss:$12 sps:$4 sm:$0xff]   ;;  %v6779_v11 = vld [vmem:[#allocation10 + $0x88c] ss:$12 sps:$4 sm:$0xff]  }
 0x2d8   : > { %4156 = vmatprep.subr.bf16.mxu1 %v6670_v8  ;;  %v6771_v8 = vld [vmem:[#allocation10 + $0x8b8] ss:$12 sps:$4 sm:$0xff]  }
 0x2da   : > { %4871 = vmatpush1.bf16.msra.mxu0 %v6695_v14  ;;  %v6780_v14 = vld [vmem:[#allocation10 + $0x870] ss:$12 sps:$4 sm:$0xff]  }
 0x2db   : > { %4157 = vmatpush2.bf16.msra.mxu1 %v6668_v12  ;;  %4872 = vmatprep.subr.bf16.mxu0 %v6700_v15  ;;  %v6777_v12 = vld [vmem:[#allocation10 + $0x888] ss:$12 sps:$4 sm:$0xff]  }
 0x2dc   : > { %4158 = vmatprep.subr.bf16.mxu1 %v6676_v13  ;;  %v6782_v13 = vld [vmem:[#allocation10 + $0x874] ss:$12 sps:$4 sm:$0xff]  }
 0x2de   : > { %4873 = vmatpush1.bf16.msra.mxu0 %v6698_v17 }
 0x2df   : > { %4159 = vmatpush2.bf16.msra.mxu1 %v6674_v16  ;;  %4874 = vmatprep.subr.bf16.mxu0 %v6703_v19 }
 0x2e0   : > { %4899 = vmatprep.subr.bf16.mxu1 %v6727_v30  ;;  %v6789_v30 = vld [vmem:[#allocation10 + $0x8f0] ss:$12 sps:$4 sm:$0xff]  }
 0x2e2   : > { %v5799_v53 = vpop.f32.mrf.mxu1  ;;  %4161 = vmatmul.mubr.bf16.vlgmr.msra.gmra.mxu1 %v7230_v9  ;;  %4875 = vmatpush2.bf16.msra.mxu0 %v6701_v0  ;;  %v6715_v9 = vld [vmem:[#allocation10 + $0x70c] ss:$12 sps:$4 sm:$0xff]  }
 0x2e3   : > { %4876 = vmatprep.subr.bf16.mxu0 %v6706_v32  ;;  %4900 = vmatpush1.bf16.msra.mxu1 %v6725_v31 }
 0x2e4   : > { %v5800_v20 = vpop.f32.mrf.mxu1  ;;  %4901 = vmatprep.subr.bf16.mxu1 %v6732_v35 }
 0x2e5   : > { %v5801_v22 = vadd.f32 %v5800_v20, %v5799_v53  ;;  %v6785_v20 = vld [vmem:[#allocation10 + $0x85c] ss:$12 sps:$4 sm:$0xff]  }
 0x2e6   : > { %v5802_v25 = vpop.f32.mrf.mxu1  ;;  %4877 = vmatpush2.bf16.msra.mxu0 %v6704_v21 }
 0x2e7   : > { %v7319_v26 = vadd.f32 %v5801_v22, %v7312_v52  ;;  %4878 = vmatprep.subr.bf16.mxu0 %v6709_v24  ;;  %4902 = vmatpush1.bf16.msra.mxu1 %v6730_v34  ;;  %v6745_v52 = vld [vmem:[#allocation10 + $0x7c8] ss:$12 sps:$4 sm:$0xff]   ;;  %v6783_v24 = vld [vmem:[#allocation10 + $0x858] ss:$12 sps:$4 sm:$0xff]  }
 0x2e8   : > { %v5803_v27 = vpop.f32.mrf.mxu1  ;;  %4903 = vmatprep.subr.bf16.mxu1 %v6737_v44 }
 0x2ea   : > { %4879 = vmatpush2.bf16.msra.mxu0 %v6707_v28 }
 0x2eb   : > { %4880 = vmatprep.subr.bf16.mxu0 %v6712_v29  ;;  %4904 = vmatpush1.bf16.msra.mxu1 %v6735_v40  ;;  %v6788_v29 = vld [vmem:[#allocation10 + $0x844] ss:$12 sps:$4 sm:$0xff]  }
 0x2ec   : > { %4905 = vmatprep.subr.bf16.mxu1 %v6742_v48 }
 0x2ee   : > { %4881 = vmatpush2.bf16.msra.mxu0 %v6710_v2  ;;  %v6786_v2 = vld [vmem:[#allocation10 + $0x840] ss:$12 sps:$4 sm:$0xff]  }
 0x2ef   : > { %4882 = vmatprep.subr.bf16.mxu0 %v6715_v9  ;;  %4906 = vmatpush1.bf16.msra.mxu1 %v6740_v47 }
 0x2f0   : > { %4907 = vmatprep.subr.bf16.mxu1 %v6747_v55 }
 0x2f2   : > { %4883 = vmatpush2.bf16.msra.mxu0 %v6713_v33 }
 0x2f3   : > { %4884 = vmatprep.subr.bf16.mxu0 %v6718_v38  ;;  %4908 = vmatpush1.bf16.msra.mxu1 %v6745_v52 }
 0x2f4   : > { %4909 = vmatprep.subr.bf16.mxu1 %v6752_v59 }
 0x2f6   : > { %4885 = vmatpush2.bf16.msra.mxu0 %v6716_v39  ;;  %v7330_v39 = vld [vmem:[#allocation9 + $0x8] sm:$0xf] }
 0x2f7   : > { %4886 = vmatprep.subr.bf16.mxu0 %v6721_v45  ;;  %4910 = vmatpush1.bf16.msra.mxu1 %v6750_v58  ;;  %v3553_v44 = vrot.slane %v7330_v39, %v7250_v23 }
 0x2f8   : > { %4911 = vmatprep.subr.bf16.mxu1 %v6757_v62 }
 0x2fa   : > { %4887 = vmatpush2.bf16.msra.mxu0 %v6719_v46 }
 0x2fb   : > { %4888 = vmatprep.subr.bf16.mxu0 %v6724_v49  ;;  %4912 = vmatpush1.bf16.msra.mxu1 %v6755_v61  ;;  %v6729_v61 = vld [vmem:[#allocation10 + $0x6b0] ss:$12 sps:$4 sm:$0xff]  }
 0x2fc   : > { %4913 = vmatprep.subr.bf16.mxu1 %v6762_v37  ;;  %v6743_v37 = vld [vmem:[#allocation10 + $0x728] ss:$12 sps:$4 sm:$0xff]  }
 0x2fe   : > { %4889 = vmatpush2.bf16.msra.mxu0 %v6722_v50 }
 0x2ff   : > { %5849 = vmatprep.subr.bf16.mxu0 %v6728_v57  ;;  %4914 = vmatpush1.bf16.msra.mxu1 %v6760_v4  ;;  %v6739_v4 = vld [vmem:[#allocation10 + $0x680] ss:$12 sps:$4 sm:$0xff]  }
 0x300   : > { %4915 = vmatprep.subr.bf16.mxu1 %v6767_v5  ;;  %v6748_v5 = vld [vmem:[#allocation10 + $0x710] ss:$12 sps:$4 sm:$0xff]  }
 0x301   : > { %v3320_v51 = vpop.f32.mrf.mxu0 }
 0x302   : > { %v3321_v60 = vadd.f32 %v3320_v51, %v7309_v56  ;;  %v6770_v56 = vld [vmem:[#allocation10 + $0x8d4] ss:$12 sps:$4 sm:$0xff]  }
 0x303   : > { %v3322_v36 = vpop.f32.mrf.mxu0  ;;  %4916 = vmatpush2.bf16.msra.mxu1 %v6765_v41  ;;  %v6744_v41 = vld [vmem:[#allocation10 + $0x668] ss:$12 sps:$4 sm:$0xff]  }
 0x304   : > { %v3323_v63 = vadd.f32 %v3322_v36, %v7315_v54  ;;  %4917 = vmatprep.subr.bf16.mxu1 %v6770_v56  ;;  %v6776_v54 = vld [vmem:[#allocation10 + $0x8a4] ss:$12 sps:$4 sm:$0xff]  }
 0x305   : > { %v3324_v1 = vpop.f32.mrf.mxu0  ;;  %v6753_v56 = vld [vmem:[#allocation10 + $0x6f8] ss:$12 sps:$4 sm:$0xff]  }
 0x306   : > { %v6734_v1 = vld [vmem:[#allocation10 + $0x698] ss:$12 sps:$4 sm:$0xff]  }
 0x307   : > { %v3325_v3 = vpop.f32.mrf.mxu0  ;;  %4918 = vmatpush2.bf16.msra.mxu1 %v6768_v6  ;;  %v6749_v6 = vld [vmem:[#allocation10 + $0x650] ss:$12 sps:$4 sm:$0xff]  }
 0x308   : > { %4919 = vmatprep.subr.bf16.mxu1 %v6773_v7  ;;  %v6738_v3 = vld [vmem:[#allocation10 + $0x740] ss:$12 sps:$4 sm:$0xff]   ;;  %v6754_v7 = vld [vmem:[#allocation10 + $0x638] ss:$12 sps:$4 sm:$0xff]  }
 0x30b   : > { %4920 = vmatpush2.bf16.msra.mxu1 %v6771_v8  ;;  %v6758_v8 = vld [vmem:[#allocation10 + $0x6e0] ss:$12 sps:$4 sm:$0xff]  }
 0x30c   : > { %4921 = vmatprep.subr.bf16.mxu1 %v6776_v54 }
 0x30f   : > { %4922 = vmatpush2.bf16.msra.mxu1 %v6774_v10  ;;  %v6759_v10 = vld [vmem:[#allocation10 + $0x620] ss:$12 sps:$4 sm:$0xff]  }
 0x310   : > { %4923 = vmatprep.subr.bf16.mxu1 %v6779_v11  ;;  %v6763_v11 = vld [vmem:[#allocation10 + $0x6c8] ss:$12 sps:$4 sm:$0xff]  }
 0x313   : > { %4924 = vmatpush2.bf16.msra.mxu1 %v6777_v12 }
 0x314   : > { %4925 = vmatprep.subr.bf16.mxu1 %v6782_v13 }
 0x317   : > { %4926 = vmatpush2.bf16.msra.mxu1 %v6780_v14  ;;  %v6764_v14 = vld [vmem:[#allocation10 + $0x608] ss:$12 sps:$4 sm:$0xff]  }
 0x318   : > { %4927 = vmatprep.subr.bf16.mxu1 %v6785_v20 }
 0x31b   : > { %4928 = vmatpush2.bf16.msra.mxu1 %v6783_v24 }
 0x31c   : > { %4929 = vmatprep.subr.bf16.mxu1 %v6788_v29 }
 0x31f   : > { %4930 = vmatpush2.bf16.msra.mxu1 %v6786_v2 }
 0x320   : > { %5871 = vmatprep.subr.bf16.mxu1 %v6789_v30  ;;  %v6790_v30 = vld [vmem:[#allocation10 + $0x830] ss:$12 sps:$4 sm:$0xff]  }
 0x321   : > { %v5821_v16 = vpop.f32.mrf.mxu0 }
 0x322   : > { %v3361_v15 = vpop.f32.mrf.mxu1 }
 0x323   : > { %v7323_v17 = vadd.f32 %v3361_v15, %v3321_v60  ;;  %v5822_v0 = vpop.f32.mrf.mxu0 }
 0x324   : > { %v3363_v19 = vpop.f32.mrf.mxu1  ;;  %v5823_v53 = vadd.f32 %v5822_v0, %v5821_v16  ;;  %v3557_v16 = vrot.slane %v7330_v39, %v7260_v42 }
 0x325   : > { %v7325_v32 = vadd.f32 %v3363_v19, %v3323_v63  ;;  %v5824_v22 = vpop.f32.mrf.mxu0  ;;  %v6733_v63 = vld [vmem:[#allocation10 + $0x758] ss:$12 sps:$4 sm:$0xff]   ;;  %v3561_v19 = vrot.slane %v7330_v39, %v7262_v43  ;;  %v6793_v43 = vld [vmem:[#allocation10 + $0x8c0] ss:$12 sps:$4 sm:$0xff]  }
 0x326   : > { %v3365_v21 = vpop.f32.mrf.mxu1  ;;  %v3403_v25 = vadd.f32 %v5823_v53, %v7319_v26  ;;  %v3549_v26 = vrot.slane %v7330_v39, %v7248_v18  ;;  %v6796_v39 = vld [vmem:[#allocation10 + $0x7e8] ss:$12 sps:$4 sm:$0xff]  }
 0x327   : > { %v5825_v28 = vpop.f32.mrf.mxu0 }
 0x328   : > { %v3366_v27 = vpop.f32.mrf.mxu1 }
 0x342   : > { %v5843_v9 = vpop.f32.mrf.mxu1 }
 0x344   : > { %v5844_v31 = vpop.f32.mrf.mxu1 }
 0x345   : > { %v5845_v33 = vadd.f32 %v5844_v31, %v5843_v9  ;;  %v6791_v31 = vld [vmem:[#allocation10 + $0x8d8] ss:$12 sps:$4 sm:$0xff]  }
 0x346   : > { %v5846_v34 = vpop.f32.mrf.mxu1 }
 0x347   : > { %v7328_v35 = vadd.f32 %v5845_v33, %v3403_v25  ;;  %v6792_v33 = vld [vmem:[#allocation10 + $0x818] ss:$12 sps:$4 sm:$0xff]   ;;  %v6794_v34 = vld [vmem:[#allocation10 + $0x800] ss:$12 sps:$4 sm:$0xff]  }
 0x348   : > { %v5847_v38 = vpop.f32.mrf.mxu1 }
 0x349   : > { %v6795_v38 = vld [vmem:[#allocation10 + $0x8a8] ss:$12 sps:$4 sm:$0xff]  }
 0x361   : > { %v4080_v45 = vpop.f32.mrf.mxu0 }
 0x362   : > { %v4121_v40 = vpop.f32.mrf.mxu1  ;;  %v4081_v46 = vadd.f32 %v4080_v45, %v3549_v26  ;;  %v6797_v26 = vld [vmem:[#allocation10 + $0x890] ss:$12 sps:$4 sm:$0xff]   ;;  %v6800_v45 = vld [vmem:[#allocation10 + $0x7b8] ss:$12 sps:$4 sm:$0xff]  }
 0x363   : > { %v4082_v48 = vpop.f32.mrf.mxu0 }
 0x364   : > { %v4123_v47 = vpop.f32.mrf.mxu1  ;;  %v4122_v49 = vadd.f32 %v4121_v40, %v4081_v46  ;;  %v4083_v50 = vadd.f32 %v4082_v48, %v3553_v44  ;;  %v6798_v40 = vld [vmem:[#allocation10 + $0x7d0] ss:$12 sps:$4 sm:$0xff]   ;;  %v6799_v44 = vld [vmem:[#allocation10 + $0x878] ss:$12 sps:$4 sm:$0xff]   ;;  %v6801_v46 = vld [vmem:[#allocation10 + $0x860] ss:$12 sps:$4 sm:$0xff]  }
 0x365   : > { %v4084_v55 = vpop.f32.mrf.mxu0  ;;  %v6803_v48 = vld [vmem:[#allocation10 + $0x848] ss:$12 sps:$4 sm:$0xff]  }
 0x366   : > { %v4125_v52 = vpop.f32.mrf.mxu1  ;;  %v4124_v57 = vadd.f32 %v4123_v47, %v4083_v50  ;;  %v4210_v59 = vmax.f32 %v4122_v49, 0.0  ;;  %v6802_v47 = vld [vmem:[#allocation10 + $0x7a0] ss:$12 sps:$4 sm:$0xff]   ;;  %v6804_v49 = vld [vmem:[#allocation10 + $0x788] ss:$12 sps:$4 sm:$0xff]  }
 0x367   : > { %v4085_v51 = vpop.f32.mrf.mxu0 }
 0x368   : > { %v4126_v58 = vpop.f32.mrf.mxu1  ;;  %v4211_v60 = vmax.f32 %v4124_v57, 0.0  ;;  %v4214_v62 = vpack.c.bf16 %v4210_v59, %v4210_v59 }
 0x36a   : > { %v4215_v36 = vpack.c.bf16 %v4211_v60, %v4211_v60 }
 0x36c   : > { %4890 = vmatprep.mubr.bf16.mxu0 %v4215_v36 }
 0x36d   : > { %4891 = vmatmul.mubr.bf16.vlgmr.msra.gmra.mxu0 %v4214_v62 }
 0x36e   : > { %5850 = vmatpush3.bf16.msra.mxu0 %v6729_v61  ;;  %4972 = vmatprep.mubr.bf16.mxu0 %v4215_v36  ;;  %v5023_v36 = vld [vmem:[#allocation12] sm:$0x7] }
 0x36f   : > { %5851 = vmatprep.subr.bf16.mxu0 %v6733_v63  ;;  %v5028_v63 = vrot.slane %v5023_v36, %v7248_v18 }
 0x372   : > { %5852 = vmatpush3.bf16.msra.mxu0 %v6734_v1 }
 0x373   : > { %5853 = vmatprep.subr.bf16.mxu0 %v6738_v3 }
 0x376   : > { %5854 = vmatpush3.bf16.msra.mxu0 %v6739_v4 }
 0x377   : > { %5855 = vmatprep.subr.bf16.mxu0 %v6743_v37  ;;  %v5032_v37 = vrot.slane %v5023_v36, %v7250_v23  ;;  %v5036_v23 = vrot.slane %v5023_v36, %v7260_v42 }
 0x37a   : > { %5856 = vmatpush3.bf16.msra.mxu0 %v6744_v41 }
 0x37b   : > { %5857 = vmatprep.subr.bf16.mxu0 %v6748_v5 }
 0x37e   : > { %5858 = vmatpush3.bf16.msra.mxu0 %v6749_v6 }
 0x37f   : > { %5859 = vmatprep.subr.bf16.mxu0 %v6753_v56 }
 0x381   : > { %v4203_v54 = vpop.f32.mrf.mxu0 }
 0x382   : > { %5860 = vmatpush3.bf16.msra.mxu0 %v6754_v7 }
 0x383   : > { %5861 = vmatprep.subr.bf16.mxu0 %v6758_v8  ;;  %v4205_v12 = vpop.f32.mrf.mxu0 }
 0x385   : > { %v4207_v13 = vpop.f32.mrf.mxu0 }
 0x386   : > { %5862 = vmatpush3.bf16.msra.mxu0 %v6759_v10 }
 0x387   : > { %5863 = vmatprep.subr.bf16.mxu0 %v6763_v11  ;;  %v4208_v15 = vpop.f32.mrf.mxu0 }
 0x38a   : > { %5864 = vmatpush3.bf16.msra.mxu0 %v6764_v14 }
 0x38d   : > { %4973 = vmatmul.mubr.bf16.vlgmr.msra.gmra.mxu0 %v4214_v62 }
 0x3a2   : > { %v4162_v0 = vpop.f32.mrf.mxu1 }
 0x3a3   : > { %v4163_v53 = vadd.f32 %v4162_v0, %v3557_v16 }
 0x3a4   : > { %v4164_v20 = vpop.f32.mrf.mxu1 }
 0x3a5   : > { %v4204_v21 = vadd.f32 %v4203_v54, %v4163_v53  ;;  %v4165_v22 = vadd.f32 %v4164_v20, %v3561_v19 }
 0x3a6   : > { %v4166_v24 = vpop.f32.mrf.mxu1 }
 0x3a7   : > { %v4206_v25 = vadd.f32 %v4205_v12, %v4165_v22  ;;  %v4212_v27 = vmax.f32 %v4204_v21, 0.0 }
 0x3a8   : > { %v4167_v28 = vpop.f32.mrf.mxu1 }
 0x3a9   : > { %v4213_v29 = vmax.f32 %v4206_v25, 0.0  ;;  %v4216_v9 = vpack.c.bf16 %v4212_v27, %v4212_v27 }
 0x3ab   : > { %v4217_v2 = vpack.c.bf16 %v4213_v29, %v4213_v29 }
 0x3ad   : > { %4931 = vmatprep.mubr.bf16.mxu1 %v4217_v2 }
 0x3ae   : > { %4932 = vmatmul.mubr.bf16.vlgmr.msra.gmra.mxu1 %v4216_v9 }
 0x3af   : > { %5872 = vmatpush3.bf16.msra.mxu1 %v6790_v30  ;;  %5012 = vmatprep.mubr.bf16.mxu1 %v4217_v2 }
 0x3b0   : > { %5873 = vmatprep.subr.bf16.mxu1 %v6791_v31 }
 0x3b3   : > { %5874 = vmatpush3.bf16.msra.mxu1 %v6792_v33 }
 0x3b4   : > { %5875 = vmatprep.subr.bf16.mxu1 %v6793_v43 }
 0x3b7   : > { %5876 = vmatpush3.bf16.msra.mxu1 %v6794_v34 }
 0x3b8   : > { %5877 = vmatprep.subr.bf16.mxu1 %v6795_v38 }
 0x3bb   : > { %5878 = vmatpush3.bf16.msra.mxu1 %v6796_v39 }
 0x3bc   : > { %5879 = vmatprep.subr.bf16.mxu1 %v6797_v26 }
 0x3bf   : > { %5880 = vmatpush3.bf16.msra.mxu1 %v6798_v40 }
 0x3c0   : > { %5881 = vmatprep.subr.bf16.mxu1 %v6799_v44 }
 0x3c3   : > { %5882 = vmatpush3.bf16.msra.mxu1 %v6800_v45 }
 0x3c4   : > { %5883 = vmatprep.subr.bf16.mxu1 %v6801_v46 }
 0x3c7   : > { %5884 = vmatpush3.bf16.msra.mxu1 %v6802_v47 }
 0x3c8   : > { %5885 = vmatprep.subr.bf16.mxu1 %v6803_v48 }
 0x3cb   : > { %5886 = vmatpush3.bf16.msra.mxu1 %v6804_v49 }
 0x3ce   : > { %5013 = vmatmul.mubr.bf16.vlgmr.msra.gmra.mxu1 %v4216_v9 }
 0x42d   : > { %v4892_v50 = vpop.f32.mrf.mxu0 }
 0x42f   : > { %v4894_v52 = vpop.f32.mrf.mxu0 }
 0x431   : > { %v4896_v55 = vpop.f32.mrf.mxu0 }
 0x433   : > { %v4897_v57 = vpop.f32.mrf.mxu0 }
 0x44d   : > { %v5865_v58 = vpop.f32.mrf.mxu0 }
 0x44f   : > { %v5866_v59 = vpop.f32.mrf.mxu0 }
 0x450   : > { %v5867_v54 = vadd.f32 %v5866_v59, %v5865_v58 }
 0x451   : > { %v5868_v51 = vpop.f32.mrf.mxu0 }
 0x453   : > { %v5869_v60 = vpop.f32.mrf.mxu0 }
 0x46e   : > { %v4933_v61 = vpop.f32.mrf.mxu1 }
 0x46f   : > { %v4934_v62 = vadd.f32 %v4933_v61, %v4892_v50 }
 0x470   : > { %v4935_v1 = vpop.f32.mrf.mxu1 }
 0x471   : > { %v5020_v3 = vadd.f32 %v4934_v62, %v7323_v17  ;;  %v4936_v4 = vadd.f32 %v4935_v1, %v4894_v52 }
 0x472   : > { %v4937_v41 = vpop.f32.mrf.mxu1 }
 0x473   : > { %v5040_v5 = vadd.f32 %v5028_v63, %v5020_v3  ;;  %v5021_v6 = vadd.f32 %v4936_v4, %v7325_v32 }
 0x474   : > { %v4938_v56 = vpop.f32.mrf.mxu1 }
 0x475   : > { %5043 = vst [vmem:[%s296_s27] sm:$0xff] %v5040_v5  ;;  %v5041_v7 = vadd.f32 %v5032_v37, %v5021_v6 }
 0x477   : > { %5044 = vst [vmem:[%s296_s27 + $0x8] sm:$0xff] %v5041_v7 }
 0x48e   : > { %v5887_v8 = vpop.f32.mrf.mxu1 }
 0x490   : > { %v5888_v18 = vpop.f32.mrf.mxu1 }
 0x491   : > { %v5889_v17 = vadd.f32 %v5888_v18, %v5887_v8 }
 0x492   : > { %v5890_v10 = vpop.f32.mrf.mxu1 }
 0x493   : > { %v5015_v11 = vadd.f32 %v5889_v17, %v5867_v54 }
 0x494   : > { %v5891_v12 = vpop.f32.mrf.mxu1 }
 0x495   : > { %v5022_v32 = vadd.f32 %v5015_v11, %v7328_v35 }
 0x497   : > { %v5042_v13 = vadd.f32 %v5036_v23, %v5022_v32 }
 0x499   : > { %5045 = vst [vmem:[%s296_s27 + $0x10] sm:$0xff] %v5042_v13 }
 0x49a   : > { %6950 = shalt.err (!%p6947_p11)
}
 0x49b   : > { %s6951_s25 = scalar_lea.hbm %s5059_s9, 384  ;;  %s6955_s8 = scalar_lea.hbm %s7389_s6, 768 }
 0x49c   : > { %p6952_p12 = scmp.ne.s32.totalorder %s5059_s9, %s6951_s25  ;;  %p6956_p4 = scmp.lt.s32.totalorder %s5059_s9, %s7389_s6 }
 0x49d   : > { %p6957_p13 = scmp.lt.s32.totalorder %s6955_s8, %s6951_s25 }
 0x49e   : > { %p6953_p1 = pnand %p6952_p12, %p7406_p7 }
 0x49f   : > { %p6958_p5 = por %p6957_p13, %p6956_p4 }
 0x4a0   : > { %p6954_p3 = pneg %p6953_p1 }
 0x4a2   : > { %p6959_p8 = pnand %p6958_p5, %p6954_p3 }
 0x4a4   : > { %6962 = shalt.err (!%p6959_p8)
}
 0x4a5   : > { %5915 = dma.vmem_to_hbm [thread:$0]  (%p7406_p7), %s5062_s20, 384, %s5059_s9, %s5047_s24  }
 0x4a6 PF: > { %s5073_s27 = sand.u32 1, %s6997_s0   ;;  %p7407_p10 = scmp.ne.s32.totalorder %s7398_s17, 0 }
 0x4a7   : > { %p7408_p6 = scmp.ge.s32.totalorder %s7009_s23, 2  ;;  %s5074_s14 = scalar_lea.sflag [#allocation6], %s5073_s27 }
 0x4a9   : > { %p5935_p0 = pnand %p7408_p6, %p7407_p10 }
 0x4ab   : > { %p5936_p2 = pneg %p5935_p0 }
 0x4ad   : > { %6992 = dma.done.wait (%p5936_p2), %s5074_s14, 384  }
 0x4ae   : > { %6994 = vsyncadd (%p5936_p2), %s5074_s14, 4294966912  ;;  %p22_p9 = scmp.ge.s32.totalorder %s7142_s30, 4   ;;  %s7409_s0 = smov %s7001_s21 }
 0x4af   : > { %s7410_s21 = smov %s7005_s22  ;;  %s7411_s22 = smov %s7153_s13 }
 0x4b0   : > { %s7412_s23 = smov %s7142_s30  ;;  %24 = sbr.rel (!%p22_p9) target bundleno = 7 (0x7), region = 101 }
 0x4b5   :  { %5079 = vsyncpa [#allocation5], 1 }
 0x4b6   :  { %5081 = vsyncpa [#allocation5 + $0x1], 1 }
 0x4b7   :  { %5082 = vsyncpa [#allocation8], 1 }
 0x4b8   :  { %5083 = vsyncpa [#allocation11], 1 }
 0x4b9   :  { %5084 = vsyncpa [#allocation6], 1 }
 0x4ba   :  { %5086 = vsyncpa [#allocation6 + $0x1], 1 }

</bundles_post_ra>
